<compile_context>
chip_gen: v7x
topology: tpu7x:2x2x1
jax: 0.10.0
libtpu: 0.0.40
codegen_flags: <defaults>
</compile_context>

<pallas_src>
import functools
import math

import jax
import jax.numpy as jnp
from jax.experimental import pallas as pl
from jax.experimental.pallas import tpu as pltpu

D_DEC = 32      # decoder_layer.d_dec
D_FF = 64
N_LAYERS = 2
EPS = 1e-6

# Row layout of the per-layer vector slab [L, 16, D_FF]:
#   0..7  : biases for (self q,k,v,o, cross q,k,v,o)      (lanes 0:D)
#   8     : FFN second bias b2                            (lanes 0:D)
#   9     : FFN first bias b1                             (lanes 0:D_FF)
#   10,11 : pre-norm a,b for sublayer 0 (self-attn)
#   12,13 : pre-norm a,b for sublayer 1 (cross-attn)
#   14,15 : pre-norm a,b for sublayer 2 (FFN)


# ----------------------------- fused kernel --------------------------------

def _decoder_stack_kernel(
        x_ref, mem_ref, sbias_ref, cbias_ref,
        w_attn_ref, w1_ref, w2_ref, vec_ref, norm_ref,
        o_ref, *, n_layers, d, d_ff, eps, scale):
    x = x_ref[...]               # [B*T, D]
    mem = mem_ref[...]           # [B*S, D]
    self_bias = sbias_ref[...]   # [B*T, B*T] additive (0 / -1e9), block-diag causal
    cross_bias = cbias_ref[...]  # [B*T, B*S] additive (0 / -1e9), block-diag

    def layernorm(v, a, b):
        # Manual LayerNorm: mean / unbiased std (D-1), eps added to the std.
        mean = jnp.mean(v, axis=-1, keepdims=True)
        diff = v - mean
        var = jnp.sum(diff * diff, axis=-1, keepdims=True) * (1.0 / (d - 1))
        inv = pl.reciprocal(jnp.sqrt(var) + eps)        # exact, EUP slot
        return a * diff * inv + b

    def softmax_rows(s):
        m = jnp.max(s, axis=-1, keepdims=True)
        p = jnp.exp(s - m)
        return p * pl.reciprocal(jnp.sum(p, axis=-1, keepdims=True))

    def attend(q, k, v, bias):
        # q·kᵀ without materializing a transpose (contract last dims).
        s = jax.lax.dot_general(q, k, (((1,), (1,)), ((), ())),
                                preferred_element_type=jnp.float32)
        s = s * scale + bias
        return jnp.dot(softmax_rows(s), v, preferred_element_type=jnp.float32)

    def proj(inp, i, j):
        # Aligned [D, D] matrix + [1, D] bias, static offsets into the slabs.
        w = w_attn_ref[i, j]                    # [D, D]
        b = vec_ref[i, j:j + 1, 0:d]            # [1, D]
        return jnp.dot(inp, w, preferred_element_type=jnp.float32) + b

    for i in range(n_layers):
        # ---- sublayer 0: masked self-attention (pre-norm + residual) ----
        xn = layernorm(x, vec_ref[i, 10:11, 0:d], vec_ref[i, 11:12, 0:d])
        a = attend(proj(xn, i, 0), proj(xn, i, 1), proj(xn, i, 2), self_bias)
        x = x + proj(a, i, 3)

        # ---- sublayer 1: cross-attention over `mem` (unmasked in-batch) ----
        xn = layernorm(x, vec_ref[i, 12:13, 0:d], vec_ref[i, 13:14, 0:d])
        a = attend(proj(xn, i, 4), proj(mem, i, 5), proj(mem, i, 6), cross_bias)
        x = x + proj(a, i, 7)

        # ---- sublayer 2: position-wise FFN ----
        xn = layernorm(x, vec_ref[i, 14:15, 0:d], vec_ref[i, 15:16, 0:d])
        h = jnp.maximum(
            jnp.dot(xn, w1_ref[i], preferred_element_type=jnp.float32)
            + vec_ref[i, 9:10, :], 0.0)
        x = x + (jnp.dot(h, w2_ref[i], preferred_element_type=jnp.float32)
                 + vec_ref[i, 8:9, 0:d])
        # TODO(synk): dropout inside sublayer connections omitted (eval mode).

    # Decoder.norm — the manual LayerNorm applied to the stack output.
    o_ref[...] = layernorm(x, norm_ref[0:1, :], norm_ref[1:2, :]).astype(o_ref.dtype)


# ----------------------------- wrapper --------------------------------------

@jax.jit
def decoder_forward(params, x, mem, tgt_mask):
    B, T, D = x.shape
    S = mem.shape[1]
    BT, BS = B * T, B * S
    scale = 1.0 / math.sqrt(D)

    # Fold batch into the sublane dim for all linear layers; the attention
    # blocks use block-diagonal additive biases so the fold stays exact.
    x2d = x.reshape(BT, D)
    mem2d = mem.reshape(BS, D)

    mask2d = tgt_mask[0]                                  # [T, T], 1 = attend
    neg = jnp.float32(-1e9)
    row_b = jnp.arange(BT, dtype=jnp.int32)[:, None] // T
    colt_b = jnp.arange(BT, dtype=jnp.int32)[None, :] // T
    cols_b = jnp.arange(BS, dtype=jnp.int32)[None, :] // S
    causal = jnp.tile(mask2d > 0, (B, B))                 # [BT, BT]
    self_bias = jnp.where((row_b == colt_b) & causal, 0.0, neg).astype(jnp.float32)
    cross_bias = jnp.where(row_b == cols_b, 0.0, neg).astype(jnp.float32)

    inputs = (x2d, mem2d, self_bias, cross_bias,
              params['w_attn'], params['w_ffn1'], params['w_ffn2'],
              params['vec_slab'], params['norm_ab'])

    # Advisory cost estimate for XLA's scheduler.
    flops_layer = (2 * D * D * (6 * BT + 2 * BS)          # 8 attn projections
                   + 4 * BT * BT * D                      # self scores + AV
                   + 4 * BT * BS * D                      # cross scores + AV
                   + 4 * BT * D * D_FF)                   # FFN
    flops = int(N_LAYERS * flops_layer)
    transcendentals = int(N_LAYERS * (BT * BT + BT * BS))
    bytes_accessed = int(sum(a.size * a.dtype.itemsize for a in inputs)
                         + BT * D * 4)

    kernel = functools.partial(
        _decoder_stack_kernel,
        n_layers=N_LAYERS, d=D, d_ff=D_FF, eps=EPS, scale=scale)

    vmem_spec = pl.BlockSpec(memory_space=pltpu.MemorySpace.VMEM)
    out2d = pl.pallas_call(
        kernel,
        out_shape=jax.ShapeDtypeStruct((BT, D), x.dtype),
        in_specs=[vmem_spec] * len(inputs),
        out_specs=vmem_spec,
        cost_estimate=pl.CostEstimate(
            flops=flops, transcendentals=transcendentals,
            bytes_accessed=bytes_accessed),
    )(*inputs)

    return out2d.reshape(B, T, D)


# ----------------------------- parameters -----------------------------------

def init_params(key):
    def lin(k, fan_in, fan_out):
        k1, k2 = jax.random.split(k)
        bound = 1.0 / math.sqrt(fan_in)
        w = jax.random.uniform(k1, (fan_in, fan_out), jnp.float32, -bound, bound)
        b = jax.random.uniform(k2, (fan_out,), jnp.float32, -bound, bound)
        return w, b

    keys = jax.random.split(key, 10)
    swq, sbq = lin(keys[0], D_DEC, D_DEC)
    swk, sbk = lin(keys[1], D_DEC, D_DEC)
    swv, sbv = lin(keys[2], D_DEC, D_DEC)
    swo, sbo = lin(keys[3], D_DEC, D_DEC)
    cwq, cbq = lin(keys[4], D_DEC, D_DEC)
    cwk, cbk = lin(keys[5], D_DEC, D_DEC)
    cwv, cbv = lin(keys[6], D_DEC, D_DEC)
    cwo, cbo = lin(keys[7], D_DEC, D_DEC)
    w1, b1 = lin(keys[8], D_DEC, D_FF)
    w2, b2 = lin(keys[9], D_FF, D_DEC)

    # clones() deep-copies the same decoder_layer -> identical initial values,
    # stacked over layers so the kernel indexes per-layer slabs.
    def rep(a):
        return jnp.stack([a] * N_LAYERS)

    ones_d = jnp.ones((D_DEC,), jnp.float32)
    zeros_d = jnp.zeros((D_DEC,), jnp.float32)

    def pad_row(v):
        return jnp.pad(v, (0, D_FF - v.shape[0]))

    vec_rows = [sbq, sbk, sbv, sbo, cbq, cbk, cbv, cbo,   # rows 0..7
                b2,                                       # row 8
                b1,                                       # row 9  (full D_FF)
                ones_d, zeros_d,                          # rows 10,11 (ln sub 0)
                ones_d, zeros_d,                          # rows 12,13 (ln sub 1)
                ones_d, zeros_d]                          # rows 14,15 (ln sub 2)

    return {
        # all 8 attention projection matrices, aligned [D, D] blocks
        'w_attn': rep(jnp.stack([swq, swk, swv, swo, cwq, cwk, cwv, cwo])),
        # FFN
        'w_ffn1': rep(w1),                                # [L, D, D_FF]
        'w_ffn2': rep(w2),                                # [L, D_FF, D]
        # every bias + per-sublayer LN param in one lane-dense slab
        'vec_slab': rep(jnp.stack([pad_row(r) for r in vec_rows])),  # [L,16,D_FF]
        # final Decoder.norm (a_2 = ones, b_2 = zeros)
        'norm_ab': jnp.stack([ones_d, zeros_d]),          # [2, D]
    }


# ----------------------------- main ------------------------------------------

if __name__ == "__main__":
    B, T, S = 2, 8, 8
    key = jax.random.PRNGKey(0)
    k_params, k_x, k_mem = jax.random.split(key, 3)

    params = init_params(k_params)
    x = jax.random.normal(k_x, (B, T, D_DEC), jnp.float32)
    mem = jax.random.normal(k_mem, (B, S, D_DEC), jnp.float32)
    # causal (subsequent) mask: 1 = attend, 0 = masked
    tgt_mask = jnp.tril(jnp.ones((T, T), jnp.float32))[None, :, :]

    out = decoder_forward(params, x, mem, tgt_mask)
    jax.block_until_ready(out)
    assert out.shape == (B, T, D_DEC)
    assert bool(jnp.all(jnp.isfinite(out)))
    print("KERNEL_OK")
</pallas_src>

<mosaic_0001>
module attributes {stable_mosaic.version = 11 : i64} {
  func.func @_decoder_stack_kernel(%arg0: memref<16x32xf32, #tpu.memory_space<vmem>>, %arg1: memref<16x32xf32, #tpu.memory_space<vmem>>, %arg2: memref<16x16xf32, #tpu.memory_space<vmem>>, %arg3: memref<16x16xf32, #tpu.memory_space<vmem>>, %arg4: memref<2x8x32x32xf32, #tpu.memory_space<vmem>>, %arg5: memref<2x32x64xf32, #tpu.memory_space<vmem>>, %arg6: memref<2x64x32xf32, #tpu.memory_space<vmem>>, %arg7: memref<2x16x64xf32, #tpu.memory_space<vmem>>, %arg8: memref<2x32xf32, #tpu.memory_space<vmem>>, %arg9: memref<16x32xf32, #tpu.memory_space<vmem>>) attributes {dimension_semantics = [], scalar_prefetch = 0 : i64, scratch_operands = 0 : i64, tpu.core_type = #tpu.core_type<tc>} {
    %c0 = arith.constant 0 : index
    %c0_0 = arith.constant 0 : index
    %0 = vector.load %arg0[%c0, %c0_0] : memref<16x32xf32, #tpu.memory_space<vmem>>, vector<16x32xf32>
    %c0_1 = arith.constant 0 : index
    %c0_2 = arith.constant 0 : index
    %1 = vector.load %arg1[%c0_1, %c0_2] : memref<16x32xf32, #tpu.memory_space<vmem>>, vector<16x32xf32>
    %c0_3 = arith.constant 0 : index
    %c0_4 = arith.constant 0 : index
    %2 = vector.load %arg2[%c0_3, %c0_4] : memref<16x16xf32, #tpu.memory_space<vmem>>, vector<16x16xf32>
    %c0_5 = arith.constant 0 : index
    %c0_6 = arith.constant 0 : index
    %3 = vector.load %arg3[%c0_5, %c0_6] : memref<16x16xf32, #tpu.memory_space<vmem>>, vector<16x16xf32>
    %c0_7 = arith.constant 0 : index
    %c10 = arith.constant 10 : index
    %c0_8 = arith.constant 0 : index
    %4 = vector.load %arg7[%c0_7, %c10, %c0_8] : memref<2x16x64xf32, #tpu.memory_space<vmem>>, vector<1x1x32xf32>
    %5 = vector.shape_cast %4 : vector<1x1x32xf32> to vector<1x32xf32>
    %c0_9 = arith.constant 0 : index
    %c11 = arith.constant 11 : index
    %c0_10 = arith.constant 0 : index
    %6 = vector.load %arg7[%c0_9, %c11, %c0_10] : memref<2x16x64xf32, #tpu.memory_space<vmem>>, vector<1x1x32xf32>
    %7 = vector.shape_cast %6 : vector<1x1x32xf32> to vector<1x32xf32>
    %cst = arith.constant dense<0.000000e+00> : vector<16xf32>
    %8 = vector.multi_reduction <add>, %0, %cst [1] : vector<16x32xf32> to vector<16xf32>
    %9 = vector.shape_cast %8 : vector<16xf32> to vector<16x1xf32>
    %cst_11 = arith.constant 3.200000e+01 : f32
    %10 = vector.broadcast %cst_11 : f32 to vector<16x1xf32>
    %11 = arith.divf %9, %10 : vector<16x1xf32>
    %12 = vector.broadcast %11 : vector<16x1xf32> to vector<16x32xf32>
    %13 = arith.subf %0, %12 : vector<16x32xf32>
    %14 = arith.mulf %13, %13 : vector<16x32xf32>
    %cst_12 = arith.constant dense<0.000000e+00> : vector<16xf32>
    %15 = vector.multi_reduction <add>, %14, %cst_12 [1] : vector<16x32xf32> to vector<16xf32>
    %16 = vector.shape_cast %15 : vector<16xf32> to vector<16x1xf32>
    %cst_13 = arith.constant 0.0322580636 : f32
    %17 = vector.broadcast %cst_13 : f32 to vector<16x1xf32>
    %18 = arith.mulf %16, %17 : vector<16x1xf32>
    %19 = math.sqrt %18 : vector<16x1xf32>
    %cst_14 = arith.constant 9.99999997E-7 : f32
    %20 = vector.broadcast %cst_14 : f32 to vector<16x1xf32>
    %21 = arith.addf %19, %20 : vector<16x1xf32>
    %22 = tpu.reciprocal %21 : vector<16x1xf32> -> vector<16x1xf32>
    %23 = vector.broadcast %5 : vector<1x32xf32> to vector<16x32xf32>
    %24 = arith.mulf %23, %13 : vector<16x32xf32>
    %25 = vector.broadcast %22 : vector<16x1xf32> to vector<16x32xf32>
    %26 = arith.mulf %24, %25 : vector<16x32xf32>
    %27 = vector.broadcast %7 : vector<1x32xf32> to vector<16x32xf32>
    %28 = arith.addf %26, %27 : vector<16x32xf32>
    %c0_15 = arith.constant 0 : index
    %c0_16 = arith.constant 0 : index
    %c0_17 = arith.constant 0 : index
    %c0_18 = arith.constant 0 : index
    %29 = vector.load %arg4[%c0_15, %c0_16, %c0_17, %c0_18] : memref<2x8x32x32xf32, #tpu.memory_space<vmem>>, vector<1x1x32x32xf32>
    %30 = vector.shape_cast %29 : vector<1x1x32x32xf32> to vector<32x32xf32>
    %c0_19 = arith.constant 0 : index
    %c0_20 = arith.constant 0 : index
    %c0_21 = arith.constant 0 : index
    %31 = vector.load %arg7[%c0_19, %c0_20, %c0_21] : memref<2x16x64xf32, #tpu.memory_space<vmem>>, vector<1x1x32xf32>
    %32 = vector.shape_cast %31 : vector<1x1x32xf32> to vector<1x32xf32>
    %cst_22 = arith.constant dense<0.000000e+00> : vector<16x32xf32>
    %33 = tpu.matmul %28, %30, %cst_22 {dimension_numbers = #tpu.dot_dimension_numbers<[1], [0], [0], [1], [0, 0, 1, 1], [], []>} : vector<16x32xf32>, vector<32x32xf32>, vector<16x32xf32> -> vector<16x32xf32>
    %34 = vector.broadcast %32 : vector<1x32xf32> to vector<16x32xf32>
    %35 = arith.addf %33, %34 : vector<16x32xf32>
    %c0_23 = arith.constant 0 : index
    %c1 = arith.constant 1 : index
    %c0_24 = arith.constant 0 : index
    %c0_25 = arith.constant 0 : index
    %36 = vector.load %arg4[%c0_23, %c1, %c0_24, %c0_25] : memref<2x8x32x32xf32, #tpu.memory_space<vmem>>, vector<1x1x32x32xf32>
    %37 = vector.shape_cast %36 : vector<1x1x32x32xf32> to vector<32x32xf32>
    %c0_26 = arith.constant 0 : index
    %c1_27 = arith.constant 1 : index
    %c0_28 = arith.constant 0 : index
    %38 = vector.load %arg7[%c0_26, %c1_27, %c0_28] : memref<2x16x64xf32, #tpu.memory_space<vmem>>, vector<1x1x32xf32>
    %39 = vector.shape_cast %38 : vector<1x1x32xf32> to vector<1x32xf32>
    %cst_29 = arith.constant dense<0.000000e+00> : vector<16x32xf32>
    %40 = tpu.matmul %28, %37, %cst_29 {dimension_numbers = #tpu.dot_dimension_numbers<[1], [0], [0], [1], [0, 0, 1, 1], [], []>} : vector<16x32xf32>, vector<32x32xf32>, vector<16x32xf32> -> vector<16x32xf32>
    %41 = vector.broadcast %39 : vector<1x32xf32> to vector<16x32xf32>
    %42 = arith.addf %40, %41 : vector<16x32xf32>
    %c0_30 = arith.constant 0 : index
    %c2 = arith.constant 2 : index
    %c0_31 = arith.constant 0 : index
    %c0_32 = arith.constant 0 : index
    %43 = vector.load %arg4[%c0_30, %c2, %c0_31, %c0_32] : memref<2x8x32x32xf32, #tpu.memory_space<vmem>>, vector<1x1x32x32xf32>
    %44 = vector.shape_cast %43 : vector<1x1x32x32xf32> to vector<32x32xf32>
    %c0_33 = arith.constant 0 : index
    %c2_34 = arith.constant 2 : index
    %c0_35 = arith.constant 0 : index
    %45 = vector.load %arg7[%c0_33, %c2_34, %c0_35] : memref<2x16x64xf32, #tpu.memory_space<vmem>>, vector<1x1x32xf32>
    %46 = vector.shape_cast %45 : vector<1x1x32xf32> to vector<1x32xf32>
    %cst_36 = arith.constant dense<0.000000e+00> : vector<16x32xf32>
    %47 = tpu.matmul %28, %44, %cst_36 {dimension_numbers = #tpu.dot_dimension_numbers<[1], [0], [0], [1], [0, 0, 1, 1], [], []>} : vector<16x32xf32>, vector<32x32xf32>, vector<16x32xf32> -> vector<16x32xf32>
    %48 = vector.broadcast %46 : vector<1x32xf32> to vector<16x32xf32>
    %49 = arith.addf %47, %48 : vector<16x32xf32>
    %cst_37 = arith.constant dense<0.000000e+00> : vector<16x16xf32>
    %50 = tpu.matmul %35, %42, %cst_37 {dimension_numbers = #tpu.dot_dimension_numbers<[1], [1], [0], [0], [0, 0, 1, 0], [], []>} : vector<16x32xf32>, vector<16x32xf32>, vector<16x16xf32> -> vector<16x16xf32>
    %cst_38 = arith.constant 0.176776692 : f32
    %51 = vector.broadcast %cst_38 : f32 to vector<16x16xf32>
    %52 = arith.mulf %50, %51 : vector<16x16xf32>
    %53 = arith.addf %52, %2 : vector<16x16xf32>
    %cst_39 = arith.constant dense<0xFF800000> : vector<16xf32>
    %54 = vector.multi_reduction <maximumf>, %53, %cst_39 [1] : vector<16x16xf32> to vector<16xf32>
    %55 = vector.shape_cast %54 : vector<16xf32> to vector<16x1xf32>
    %56 = vector.broadcast %55 : vector<16x1xf32> to vector<16x16xf32>
    %57 = arith.subf %53, %56 : vector<16x16xf32>
    %58 = math.exp %57 : vector<16x16xf32>
    %cst_40 = arith.constant dense<0.000000e+00> : vector<16xf32>
    %59 = vector.multi_reduction <add>, %58, %cst_40 [1] : vector<16x16xf32> to vector<16xf32>
    %60 = vector.shape_cast %59 : vector<16xf32> to vector<16x1xf32>
    %61 = tpu.reciprocal %60 : vector<16x1xf32> -> vector<16x1xf32>
    %62 = vector.broadcast %61 : vector<16x1xf32> to vector<16x16xf32>
    %63 = arith.mulf %58, %62 : vector<16x16xf32>
    %cst_41 = arith.constant dense<0.000000e+00> : vector<16x32xf32>
    %64 = tpu.matmul %63, %49, %cst_41 {dimension_numbers = #tpu.dot_dimension_numbers<[1], [0], [0], [1], [0, 0, 1, 1], [], []>} : vector<16x16xf32>, vector<16x32xf32>, vector<16x32xf32> -> vector<16x32xf32>
    %c0_42 = arith.constant 0 : index
    %c3 = arith.constant 3 : index
    %c0_43 = arith.constant 0 : index
    %c0_44 = arith.constant 0 : index
    %65 = vector.load %arg4[%c0_42, %c3, %c0_43, %c0_44] : memref<2x8x32x32xf32, #tpu.memory_space<vmem>>, vector<1x1x32x32xf32>
    %66 = vector.shape_cast %65 : vector<1x1x32x32xf32> to vector<32x32xf32>
    %c0_45 = arith.constant 0 : index
    %c3_46 = arith.constant 3 : index
    %c0_47 = arith.constant 0 : index
    %67 = vector.load %arg7[%c0_45, %c3_46, %c0_47] : memref<2x16x64xf32, #tpu.memory_space<vmem>>, vector<1x1x32xf32>
    %68 = vector.shape_cast %67 : vector<1x1x32xf32> to vector<1x32xf32>
    %cst_48 = arith.constant dense<0.000000e+00> : vector<16x32xf32>
    %69 = tpu.matmul %64, %66, %cst_48 {dimension_numbers = #tpu.dot_dimension_numbers<[1], [0], [0], [1], [0, 0, 1, 1], [], []>} : vector<16x32xf32>, vector<32x32xf32>, vector<16x32xf32> -> vector<16x32xf32>
    %70 = vector.broadcast %68 : vector<1x32xf32> to vector<16x32xf32>
    %71 = arith.addf %69, %70 : vector<16x32xf32>
    %72 = arith.addf %0, %71 : vector<16x32xf32>
    %c0_49 = arith.constant 0 : index
    %c12 = arith.constant 12 : index
    %c0_50 = arith.constant 0 : index
    %73 = vector.load %arg7[%c0_49, %c12, %c0_50] : memref<2x16x64xf32, #tpu.memory_space<vmem>>, vector<1x1x32xf32>
    %74 = vector.shape_cast %73 : vector<1x1x32xf32> to vector<1x32xf32>
    %c0_51 = arith.constant 0 : index
    %c13 = arith.constant 13 : index
    %c0_52 = arith.constant 0 : index
    %75 = vector.load %arg7[%c0_51, %c13, %c0_52] : memref<2x16x64xf32, #tpu.memory_space<vmem>>, vector<1x1x32xf32>
    %76 = vector.shape_cast %75 : vector<1x1x32xf32> to vector<1x32xf32>
    %cst_53 = arith.constant dense<0.000000e+00> : vector<16xf32>
    %77 = vector.multi_reduction <add>, %72, %cst_53 [1] : vector<16x32xf32> to vector<16xf32>
    %78 = vector.shape_cast %77 : vector<16xf32> to vector<16x1xf32>
    %cst_54 = arith.constant 3.200000e+01 : f32
    %79 = vector.broadcast %cst_54 : f32 to vector<16x1xf32>
    %80 = arith.divf %78, %79 : vector<16x1xf32>
    %81 = vector.broadcast %80 : vector<16x1xf32> to vector<16x32xf32>
    %82 = arith.subf %72, %81 : vector<16x32xf32>
    %83 = arith.mulf %82, %82 : vector<16x32xf32>
    %cst_55 = arith.constant dense<0.000000e+00> : vector<16xf32>
    %84 = vector.multi_reduction <add>, %83, %cst_55 [1] : vector<16x32xf32> to vector<16xf32>
    %85 = vector.shape_cast %84 : vector<16xf32> to vector<16x1xf32>
    %cst_56 = arith.constant 0.0322580636 : f32
    %86 = vector.broadcast %cst_56 : f32 to vector<16x1xf32>
    %87 = arith.mulf %85, %86 : vector<16x1xf32>
    %88 = math.sqrt %87 : vector<16x1xf32>
    %cst_57 = arith.constant 9.99999997E-7 : f32
    %89 = vector.broadcast %cst_57 : f32 to vector<16x1xf32>
    %90 = arith.addf %88, %89 : vector<16x1xf32>
    %91 = tpu.reciprocal %90 : vector<16x1xf32> -> vector<16x1xf32>
    %92 = vector.broadcast %74 : vector<1x32xf32> to vector<16x32xf32>
    %93 = arith.mulf %92, %82 : vector<16x32xf32>
    %94 = vector.broadcast %91 : vector<16x1xf32> to vector<16x32xf32>
    %95 = arith.mulf %93, %94 : vector<16x32xf32>
    %96 = vector.broadcast %76 : vector<1x32xf32> to vector<16x32xf32>
    %97 = arith.addf %95, %96 : vector<16x32xf32>
    %c0_58 = arith.constant 0 : index
    %c4 = arith.constant 4 : index
    %c0_59 = arith.constant 0 : index
    %c0_60 = arith.constant 0 : index
    %98 = vector.load %arg4[%c0_58, %c4, %c0_59, %c0_60] : memref<2x8x32x32xf32, #tpu.memory_space<vmem>>, vector<1x1x32x32xf32>
    %99 = vector.shape_cast %98 : vector<1x1x32x32xf32> to vector<32x32xf32>
    %c0_61 = arith.constant 0 : index
    %c4_62 = arith.constant 4 : index
    %c0_63 = arith.constant 0 : index
    %100 = vector.load %arg7[%c0_61, %c4_62, %c0_63] : memref<2x16x64xf32, #tpu.memory_space<vmem>>, vector<1x1x32xf32>
    %101 = vector.shape_cast %100 : vector<1x1x32xf32> to vector<1x32xf32>
    %cst_64 = arith.constant dense<0.000000e+00> : vector<16x32xf32>
    %102 = tpu.matmul %97, %99, %cst_64 {dimension_numbers = #tpu.dot_dimension_numbers<[1], [0], [0], [1], [0, 0, 1, 1], [], []>} : vector<16x32xf32>, vector<32x32xf32>, vector<16x32xf32> -> vector<16x32xf32>
    %103 = vector.broadcast %101 : vector<1x32xf32> to vector<16x32xf32>
    %104 = arith.addf %102, %103 : vector<16x32xf32>
    %c0_65 = arith.constant 0 : index
    %c5 = arith.constant 5 : index
    %c0_66 = arith.constant 0 : index
    %c0_67 = arith.constant 0 : index
    %105 = vector.load %arg4[%c0_65, %c5, %c0_66, %c0_67] : memref<2x8x32x32xf32, #tpu.memory_space<vmem>>, vector<1x1x32x32xf32>
    %106 = vector.shape_cast %105 : vector<1x1x32x32xf32> to vector<32x32xf32>
    %c0_68 = arith.constant 0 : index
    %c5_69 = arith.constant 5 : index
    %c0_70 = arith.constant 0 : index
    %107 = vector.load %arg7[%c0_68, %c5_69, %c0_70] : memref<2x16x64xf32, #tpu.memory_space<vmem>>, vector<1x1x32xf32>
    %108 = vector.shape_cast %107 : vector<1x1x32xf32> to vector<1x32xf32>
    %cst_71 = arith.constant dense<0.000000e+00> : vector<16x32xf32>
    %109 = tpu.matmul %1, %106, %cst_71 {dimension_numbers = #tpu.dot_dimension_numbers<[1], [0], [0], [1], [0, 0, 1, 1], [], []>} : vector<16x32xf32>, vector<32x32xf32>, vector<16x32xf32> -> vector<16x32xf32>
    %110 = vector.broadcast %108 : vector<1x32xf32> to vector<16x32xf32>
    %111 = arith.addf %109, %110 : vector<16x32xf32>
    %c0_72 = arith.constant 0 : index
    %c6 = arith.constant 6 : index
    %c0_73 = arith.constant 0 : index
    %c0_74 = arith.constant 0 : index
    %112 = vector.load %arg4[%c0_72, %c6, %c0_73, %c0_74] : memref<2x8x32x32xf32, #tpu.memory_space<vmem>>, vector<1x1x32x32xf32>
    %113 = vector.shape_cast %112 : vector<1x1x32x32xf32> to vector<32x32xf32>
    %c0_75 = arith.constant 0 : index
    %c6_76 = arith.constant 6 : index
    %c0_77 = arith.constant 0 : index
    %114 = vector.load %arg7[%c0_75, %c6_76, %c0_77] : memref<2x16x64xf32, #tpu.memory_space<vmem>>, vector<1x1x32xf32>
    %115 = vector.shape_cast %114 : vector<1x1x32xf32> to vector<1x32xf32>
    %cst_78 = arith.constant dense<0.000000e+00> : vector<16x32xf32>
    %116 = tpu.matmul %1, %113, %cst_78 {dimension_numbers = #tpu.dot_dimension_numbers<[1], [0], [0], [1], [0, 0, 1, 1], [], []>} : vector<16x32xf32>, vector<32x32xf32>, vector<16x32xf32> -> vector<16x32xf32>
    %117 = vector.broadcast %115 : vector<1x32xf32> to vector<16x32xf32>
    %118 = arith.addf %116, %117 : vector<16x32xf32>
    %cst_79 = arith.constant dense<0.000000e+00> : vector<16x16xf32>
    %119 = tpu.matmul %104, %111, %cst_79 {dimension_numbers = #tpu.dot_dimension_numbers<[1], [1], [0], [0], [0, 0, 1, 0], [], []>} : vector<16x32xf32>, vector<16x32xf32>, vector<16x16xf32> -> vector<16x16xf32>
    %cst_80 = arith.constant 0.176776692 : f32
    %120 = vector.broadcast %cst_80 : f32 to vector<16x16xf32>
    %121 = arith.mulf %119, %120 : vector<16x16xf32>
    %122 = arith.addf %121, %3 : vector<16x16xf32>
    %cst_81 = arith.constant dense<0xFF800000> : vector<16xf32>
    %123 = vector.multi_reduction <maximumf>, %122, %cst_81 [1] : vector<16x16xf32> to vector<16xf32>
    %124 = vector.shape_cast %123 : vector<16xf32> to vector<16x1xf32>
    %125 = vector.broadcast %124 : vector<16x1xf32> to vector<16x16xf32>
    %126 = arith.subf %122, %125 : vector<16x16xf32>
    %127 = math.exp %126 : vector<16x16xf32>
    %cst_82 = arith.constant dense<0.000000e+00> : vector<16xf32>
    %128 = vector.multi_reduction <add>, %127, %cst_82 [1] : vector<16x16xf32> to vector<16xf32>
    %129 = vector.shape_cast %128 : vector<16xf32> to vector<16x1xf32>
    %130 = tpu.reciprocal %129 : vector<16x1xf32> -> vector<16x1xf32>
    %131 = vector.broadcast %130 : vector<16x1xf32> to vector<16x16xf32>
    %132 = arith.mulf %127, %131 : vector<16x16xf32>
    %cst_83 = arith.constant dense<0.000000e+00> : vector<16x32xf32>
    %133 = tpu.matmul %132, %118, %cst_83 {dimension_numbers = #tpu.dot_dimension_numbers<[1], [0], [0], [1], [0, 0, 1, 1], [], []>} : vector<16x16xf32>, vector<16x32xf32>, vector<16x32xf32> -> vector<16x32xf32>
    %c0_84 = arith.constant 0 : index
    %c7 = arith.constant 7 : index
    %c0_85 = arith.constant 0 : index
    %c0_86 = arith.constant 0 : index
    %134 = vector.load %arg4[%c0_84, %c7, %c0_85, %c0_86] : memref<2x8x32x32xf32, #tpu.memory_space<vmem>>, vector<1x1x32x32xf32>
    %135 = vector.shape_cast %134 : vector<1x1x32x32xf32> to vector<32x32xf32>
    %c0_87 = arith.constant 0 : index
    %c7_88 = arith.constant 7 : index
    %c0_89 = arith.constant 0 : index
    %136 = vector.load %arg7[%c0_87, %c7_88, %c0_89] : memref<2x16x64xf32, #tpu.memory_space<vmem>>, vector<1x1x32xf32>
    %137 = vector.shape_cast %136 : vector<1x1x32xf32> to vector<1x32xf32>
    %cst_90 = arith.constant dense<0.000000e+00> : vector<16x32xf32>
    %138 = tpu.matmul %133, %135, %cst_90 {dimension_numbers = #tpu.dot_dimension_numbers<[1], [0], [0], [1], [0, 0, 1, 1], [], []>} : vector<16x32xf32>, vector<32x32xf32>, vector<16x32xf32> -> vector<16x32xf32>
    %139 = vector.broadcast %137 : vector<1x32xf32> to vector<16x32xf32>
    %140 = arith.addf %138, %139 : vector<16x32xf32>
    %141 = arith.addf %72, %140 : vector<16x32xf32>
    %c0_91 = arith.constant 0 : index
    %c14 = arith.constant 14 : index
    %c0_92 = arith.constant 0 : index
    %142 = vector.load %arg7[%c0_91, %c14, %c0_92] : memref<2x16x64xf32, #tpu.memory_space<vmem>>, vector<1x1x32xf32>
    %143 = vector.shape_cast %142 : vector<1x1x32xf32> to vector<1x32xf32>
    %c0_93 = arith.constant 0 : index
    %c15 = arith.constant 15 : index
    %c0_94 = arith.constant 0 : index
    %144 = vector.load %arg7[%c0_93, %c15, %c0_94] : memref<2x16x64xf32, #tpu.memory_space<vmem>>, vector<1x1x32xf32>
    %145 = vector.shape_cast %144 : vector<1x1x32xf32> to vector<1x32xf32>
    %cst_95 = arith.constant dense<0.000000e+00> : vector<16xf32>
    %146 = vector.multi_reduction <add>, %141, %cst_95 [1] : vector<16x32xf32> to vector<16xf32>
    %147 = vector.shape_cast %146 : vector<16xf32> to vector<16x1xf32>
    %cst_96 = arith.constant 3.200000e+01 : f32
    %148 = vector.broadcast %cst_96 : f32 to vector<16x1xf32>
    %149 = arith.divf %147, %148 : vector<16x1xf32>
    %150 = vector.broadcast %149 : vector<16x1xf32> to vector<16x32xf32>
    %151 = arith.subf %141, %150 : vector<16x32xf32>
    %152 = arith.mulf %151, %151 : vector<16x32xf32>
    %cst_97 = arith.constant dense<0.000000e+00> : vector<16xf32>
    %153 = vector.multi_reduction <add>, %152, %cst_97 [1] : vector<16x32xf32> to vector<16xf32>
    %154 = vector.shape_cast %153 : vector<16xf32> to vector<16x1xf32>
    %cst_98 = arith.constant 0.0322580636 : f32
    %155 = vector.broadcast %cst_98 : f32 to vector<16x1xf32>
    %156 = arith.mulf %154, %155 : vector<16x1xf32>
    %157 = math.sqrt %156 : vector<16x1xf32>
    %cst_99 = arith.constant 9.99999997E-7 : f32
    %158 = vector.broadcast %cst_99 : f32 to vector<16x1xf32>
    %159 = arith.addf %157, %158 : vector<16x1xf32>
    %160 = tpu.reciprocal %159 : vector<16x1xf32> -> vector<16x1xf32>
    %161 = vector.broadcast %143 : vector<1x32xf32> to vector<16x32xf32>
    %162 = arith.mulf %161, %151 : vector<16x32xf32>
    %163 = vector.broadcast %160 : vector<16x1xf32> to vector<16x32xf32>
    %164 = arith.mulf %162, %163 : vector<16x32xf32>
    %165 = vector.broadcast %145 : vector<1x32xf32> to vector<16x32xf32>
    %166 = arith.addf %164, %165 : vector<16x32xf32>
    %c0_100 = arith.constant 0 : index
    %c0_101 = arith.constant 0 : index
    %c0_102 = arith.constant 0 : index
    %167 = vector.load %arg5[%c0_100, %c0_101, %c0_102] : memref<2x32x64xf32, #tpu.memory_space<vmem>>, vector<1x32x64xf32>
    %168 = vector.shape_cast %167 : vector<1x32x64xf32> to vector<32x64xf32>
    %cst_103 = arith.constant dense<0.000000e+00> : vector<16x64xf32>
    %169 = tpu.matmul %166, %168, %cst_103 {dimension_numbers = #tpu.dot_dimension_numbers<[1], [0], [0], [1], [0, 0, 1, 1], [], []>} : vector<16x32xf32>, vector<32x64xf32>, vector<16x64xf32> -> vector<16x64xf32>
    %c0_104 = arith.constant 0 : index
    %c9 = arith.constant 9 : index
    %c0_105 = arith.constant 0 : index
    %170 = vector.load %arg7[%c0_104, %c9, %c0_105] : memref<2x16x64xf32, #tpu.memory_space<vmem>>, vector<1x1x64xf32>
    %171 = vector.shape_cast %170 : vector<1x1x64xf32> to vector<1x64xf32>
    %172 = vector.broadcast %171 : vector<1x64xf32> to vector<16x64xf32>
    %173 = arith.addf %169, %172 : vector<16x64xf32>
    %cst_106 = arith.constant 0.000000e+00 : f32
    %174 = vector.broadcast %cst_106 : f32 to vector<16x64xf32>
    %175 = arith.maximumf %173, %174 : vector<16x64xf32>
    %c0_107 = arith.constant 0 : index
    %c0_108 = arith.constant 0 : index
    %c0_109 = arith.constant 0 : index
    %176 = vector.load %arg6[%c0_107, %c0_108, %c0_109] : memref<2x64x32xf32, #tpu.memory_space<vmem>>, vector<1x64x32xf32>
    %177 = vector.shape_cast %176 : vector<1x64x32xf32> to vector<64x32xf32>
    %cst_110 = arith.constant dense<0.000000e+00> : vector<16x32xf32>
    %178 = tpu.matmul %175, %177, %cst_110 {dimension_numbers = #tpu.dot_dimension_numbers<[1], [0], [0], [1], [0, 0, 1, 1], [], []>} : vector<16x64xf32>, vector<64x32xf32>, vector<16x32xf32> -> vector<16x32xf32>
    %c0_111 = arith.constant 0 : index
    %c8 = arith.constant 8 : index
    %c0_112 = arith.constant 0 : index
    %179 = vector.load %arg7[%c0_111, %c8, %c0_112] : memref<2x16x64xf32, #tpu.memory_space<vmem>>, vector<1x1x32xf32>
    %180 = vector.shape_cast %179 : vector<1x1x32xf32> to vector<1x32xf32>
    %181 = vector.broadcast %180 : vector<1x32xf32> to vector<16x32xf32>
    %182 = arith.addf %178, %181 : vector<16x32xf32>
    %183 = arith.addf %141, %182 : vector<16x32xf32>
    %c1_113 = arith.constant 1 : index
    %c10_114 = arith.constant 10 : index
    %c0_115 = arith.constant 0 : index
    %184 = vector.load %arg7[%c1_113, %c10_114, %c0_115] : memref<2x16x64xf32, #tpu.memory_space<vmem>>, vector<1x1x32xf32>
    %185 = vector.shape_cast %184 : vector<1x1x32xf32> to vector<1x32xf32>
    %c1_116 = arith.constant 1 : index
    %c11_117 = arith.constant 11 : index
    %c0_118 = arith.constant 0 : index
    %186 = vector.load %arg7[%c1_116, %c11_117, %c0_118] : memref<2x16x64xf32, #tpu.memory_space<vmem>>, vector<1x1x32xf32>
    %187 = vector.shape_cast %186 : vector<1x1x32xf32> to vector<1x32xf32>
    %cst_119 = arith.constant dense<0.000000e+00> : vector<16xf32>
    %188 = vector.multi_reduction <add>, %183, %cst_119 [1] : vector<16x32xf32> to vector<16xf32>
    %189 = vector.shape_cast %188 : vector<16xf32> to vector<16x1xf32>
    %cst_120 = arith.constant 3.200000e+01 : f32
    %190 = vector.broadcast %cst_120 : f32 to vector<16x1xf32>
    %191 = arith.divf %189, %190 : vector<16x1xf32>
    %192 = vector.broadcast %191 : vector<16x1xf32> to vector<16x32xf32>
    %193 = arith.subf %183, %192 : vector<16x32xf32>
    %194 = arith.mulf %193, %193 : vector<16x32xf32>
    %cst_121 = arith.constant dense<0.000000e+00> : vector<16xf32>
    %195 = vector.multi_reduction <add>, %194, %cst_121 [1] : vector<16x32xf32> to vector<16xf32>
    %196 = vector.shape_cast %195 : vector<16xf32> to vector<16x1xf32>
    %cst_122 = arith.constant 0.0322580636 : f32
    %197 = vector.broadcast %cst_122 : f32 to vector<16x1xf32>
    %198 = arith.mulf %196, %197 : vector<16x1xf32>
    %199 = math.sqrt %198 : vector<16x1xf32>
    %cst_123 = arith.constant 9.99999997E-7 : f32
    %200 = vector.broadcast %cst_123 : f32 to vector<16x1xf32>
    %201 = arith.addf %199, %200 : vector<16x1xf32>
    %202 = tpu.reciprocal %201 : vector<16x1xf32> -> vector<16x1xf32>
    %203 = vector.broadcast %185 : vector<1x32xf32> to vector<16x32xf32>
    %204 = arith.mulf %203, %193 : vector<16x32xf32>
    %205 = vector.broadcast %202 : vector<16x1xf32> to vector<16x32xf32>
    %206 = arith.mulf %204, %205 : vector<16x32xf32>
    %207 = vector.broadcast %187 : vector<1x32xf32> to vector<16x32xf32>
    %208 = arith.addf %206, %207 : vector<16x32xf32>
    %c1_124 = arith.constant 1 : index
    %c0_125 = arith.constant 0 : index
    %c0_126 = arith.constant 0 : index
    %c0_127 = arith.constant 0 : index
    %209 = vector.load %arg4[%c1_124, %c0_125, %c0_126, %c0_127] : memref<2x8x32x32xf32, #tpu.memory_space<vmem>>, vector<1x1x32x32xf32>
    %210 = vector.shape_cast %209 : vector<1x1x32x32xf32> to vector<32x32xf32>
    %c1_128 = arith.constant 1 : index
    %c0_129 = arith.constant 0 : index
    %c0_130 = arith.constant 0 : index
    %211 = vector.load %arg7[%c1_128, %c0_129, %c0_130] : memref<2x16x64xf32, #tpu.memory_space<vmem>>, vector<1x1x32xf32>
    %212 = vector.shape_cast %211 : vector<1x1x32xf32> to vector<1x32xf32>
    %cst_131 = arith.constant dense<0.000000e+00> : vector<16x32xf32>
    %213 = tpu.matmul %208, %210, %cst_131 {dimension_numbers = #tpu.dot_dimension_numbers<[1], [0], [0], [1], [0, 0, 1, 1], [], []>} : vector<16x32xf32>, vector<32x32xf32>, vector<16x32xf32> -> vector<16x32xf32>
    %214 = vector.broadcast %212 : vector<1x32xf32> to vector<16x32xf32>
    %215 = arith.addf %213, %214 : vector<16x32xf32>
    %c1_132 = arith.constant 1 : index
    %c1_133 = arith.constant 1 : index
    %c0_134 = arith.constant 0 : index
    %c0_135 = arith.constant 0 : index
    %216 = vector.load %arg4[%c1_132, %c1_133, %c0_134, %c0_135] : memref<2x8x32x32xf32, #tpu.memory_space<vmem>>, vector<1x1x32x32xf32>
    %217 = vector.shape_cast %216 : vector<1x1x32x32xf32> to vector<32x32xf32>
    %c1_136 = arith.constant 1 : index
    %c1_137 = arith.constant 1 : index
    %c0_138 = arith.constant 0 : index
    %218 = vector.load %arg7[%c1_136, %c1_137, %c0_138] : memref<2x16x64xf32, #tpu.memory_space<vmem>>, vector<1x1x32xf32>
    %219 = vector.shape_cast %218 : vector<1x1x32xf32> to vector<1x32xf32>
    %cst_139 = arith.constant dense<0.000000e+00> : vector<16x32xf32>
    %220 = tpu.matmul %208, %217, %cst_139 {dimension_numbers = #tpu.dot_dimension_numbers<[1], [0], [0], [1], [0, 0, 1, 1], [], []>} : vector<16x32xf32>, vector<32x32xf32>, vector<16x32xf32> -> vector<16x32xf32>
    %221 = vector.broadcast %219 : vector<1x32xf32> to vector<16x32xf32>
    %222 = arith.addf %220, %221 : vector<16x32xf32>
    %c1_140 = arith.constant 1 : index
    %c2_141 = arith.constant 2 : index
    %c0_142 = arith.constant 0 : index
    %c0_143 = arith.constant 0 : index
    %223 = vector.load %arg4[%c1_140, %c2_141, %c0_142, %c0_143] : memref<2x8x32x32xf32, #tpu.memory_space<vmem>>, vector<1x1x32x32xf32>
    %224 = vector.shape_cast %223 : vector<1x1x32x32xf32> to vector<32x32xf32>
    %c1_144 = arith.constant 1 : index
    %c2_145 = arith.constant 2 : index
    %c0_146 = arith.constant 0 : index
    %225 = vector.load %arg7[%c1_144, %c2_145, %c0_146] : memref<2x16x64xf32, #tpu.memory_space<vmem>>, vector<1x1x32xf32>
    %226 = vector.shape_cast %225 : vector<1x1x32xf32> to vector<1x32xf32>
    %cst_147 = arith.constant dense<0.000000e+00> : vector<16x32xf32>
    %227 = tpu.matmul %208, %224, %cst_147 {dimension_numbers = #tpu.dot_dimension_numbers<[1], [0], [0], [1], [0, 0, 1, 1], [], []>} : vector<16x32xf32>, vector<32x32xf32>, vector<16x32xf32> -> vector<16x32xf32>
    %228 = vector.broadcast %226 : vector<1x32xf32> to vector<16x32xf32>
    %229 = arith.addf %227, %228 : vector<16x32xf32>
    %cst_148 = arith.constant dense<0.000000e+00> : vector<16x16xf32>
    %230 = tpu.matmul %215, %222, %cst_148 {dimension_numbers = #tpu.dot_dimension_numbers<[1], [1], [0], [0], [0, 0, 1, 0], [], []>} : vector<16x32xf32>, vector<16x32xf32>, vector<16x16xf32> -> vector<16x16xf32>
    %cst_149 = arith.constant 0.176776692 : f32
    %231 = vector.broadcast %cst_149 : f32 to vector<16x16xf32>
    %232 = arith.mulf %230, %231 : vector<16x16xf32>
    %233 = arith.addf %232, %2 : vector<16x16xf32>
    %cst_150 = arith.constant dense<0xFF800000> : vector<16xf32>
    %234 = vector.multi_reduction <maximumf>, %233, %cst_150 [1] : vector<16x16xf32> to vector<16xf32>
    %235 = vector.shape_cast %234 : vector<16xf32> to vector<16x1xf32>
    %236 = vector.broadcast %235 : vector<16x1xf32> to vector<16x16xf32>
    %237 = arith.subf %233, %236 : vector<16x16xf32>
    %238 = math.exp %237 : vector<16x16xf32>
    %cst_151 = arith.constant dense<0.000000e+00> : vector<16xf32>
    %239 = vector.multi_reduction <add>, %238, %cst_151 [1] : vector<16x16xf32> to vector<16xf32>
    %240 = vector.shape_cast %239 : vector<16xf32> to vector<16x1xf32>
    %241 = tpu.reciprocal %240 : vector<16x1xf32> -> vector<16x1xf32>
    %242 = vector.broadcast %241 : vector<16x1xf32> to vector<16x16xf32>
    %243 = arith.mulf %238, %242 : vector<16x16xf32>
    %cst_152 = arith.constant dense<0.000000e+00> : vector<16x32xf32>
    %244 = tpu.matmul %243, %229, %cst_152 {dimension_numbers = #tpu.dot_dimension_numbers<[1], [0], [0], [1], [0, 0, 1, 1], [], []>} : vector<16x16xf32>, vector<16x32xf32>, vector<16x32xf32> -> vector<16x32xf32>
    %c1_153 = arith.constant 1 : index
    %c3_154 = arith.constant 3 : index
    %c0_155 = arith.constant 0 : index
    %c0_156 = arith.constant 0 : index
    %245 = vector.load %arg4[%c1_153, %c3_154, %c0_155, %c0_156] : memref<2x8x32x32xf32, #tpu.memory_space<vmem>>, vector<1x1x32x32xf32>
    %246 = vector.shape_cast %245 : vector<1x1x32x32xf32> to vector<32x32xf32>
    %c1_157 = arith.constant 1 : index
    %c3_158 = arith.constant 3 : index
    %c0_159 = arith.constant 0 : index
    %247 = vector.load %arg7[%c1_157, %c3_158, %c0_159] : memref<2x16x64xf32, #tpu.memory_space<vmem>>, vector<1x1x32xf32>
    %248 = vector.shape_cast %247 : vector<1x1x32xf32> to vector<1x32xf32>
    %cst_160 = arith.constant dense<0.000000e+00> : vector<16x32xf32>
    %249 = tpu.matmul %244, %246, %cst_160 {dimension_numbers = #tpu.dot_dimension_numbers<[1], [0], [0], [1], [0, 0, 1, 1], [], []>} : vector<16x32xf32>, vector<32x32xf32>, vector<16x32xf32> -> vector<16x32xf32>
    %250 = vector.broadcast %248 : vector<1x32xf32> to vector<16x32xf32>
    %251 = arith.addf %249, %250 : vector<16x32xf32>
    %252 = arith.addf %183, %251 : vector<16x32xf32>
    %c1_161 = arith.constant 1 : index
    %c12_162 = arith.constant 12 : index
    %c0_163 = arith.constant 0 : index
    %253 = vector.load %arg7[%c1_161, %c12_162, %c0_163] : memref<2x16x64xf32, #tpu.memory_space<vmem>>, vector<1x1x32xf32>
    %254 = vector.shape_cast %253 : vector<1x1x32xf32> to vector<1x32xf32>
    %c1_164 = arith.constant 1 : index
    %c13_165 = arith.constant 13 : index
    %c0_166 = arith.constant 0 : index
    %255 = vector.load %arg7[%c1_164, %c13_165, %c0_166] : memref<2x16x64xf32, #tpu.memory_space<vmem>>, vector<1x1x32xf32>
    %256 = vector.shape_cast %255 : vector<1x1x32xf32> to vector<1x32xf32>
    %cst_167 = arith.constant dense<0.000000e+00> : vector<16xf32>
    %257 = vector.multi_reduction <add>, %252, %cst_167 [1] : vector<16x32xf32> to vector<16xf32>
    %258 = vector.shape_cast %257 : vector<16xf32> to vector<16x1xf32>
    %cst_168 = arith.constant 3.200000e+01 : f32
    %259 = vector.broadcast %cst_168 : f32 to vector<16x1xf32>
    %260 = arith.divf %258, %259 : vector<16x1xf32>
    %261 = vector.broadcast %260 : vector<16x1xf32> to vector<16x32xf32>
    %262 = arith.subf %252, %261 : vector<16x32xf32>
    %263 = arith.mulf %262, %262 : vector<16x32xf32>
    %cst_169 = arith.constant dense<0.000000e+00> : vector<16xf32>
    %264 = vector.multi_reduction <add>, %263, %cst_169 [1] : vector<16x32xf32> to vector<16xf32>
    %265 = vector.shape_cast %264 : vector<16xf32> to vector<16x1xf32>
    %cst_170 = arith.constant 0.0322580636 : f32
    %266 = vector.broadcast %cst_170 : f32 to vector<16x1xf32>
    %267 = arith.mulf %265, %266 : vector<16x1xf32>
    %268 = math.sqrt %267 : vector<16x1xf32>
    %cst_171 = arith.constant 9.99999997E-7 : f32
    %269 = vector.broadcast %cst_171 : f32 to vector<16x1xf32>
    %270 = arith.addf %268, %269 : vector<16x1xf32>
    %271 = tpu.reciprocal %270 : vector<16x1xf32> -> vector<16x1xf32>
    %272 = vector.broadcast %254 : vector<1x32xf32> to vector<16x32xf32>
    %273 = arith.mulf %272, %262 : vector<16x32xf32>
    %274 = vector.broadcast %271 : vector<16x1xf32> to vector<16x32xf32>
    %275 = arith.mulf %273, %274 : vector<16x32xf32>
    %276 = vector.broadcast %256 : vector<1x32xf32> to vector<16x32xf32>
    %277 = arith.addf %275, %276 : vector<16x32xf32>
    %c1_172 = arith.constant 1 : index
    %c4_173 = arith.constant 4 : index
    %c0_174 = arith.constant 0 : index
    %c0_175 = arith.constant 0 : index
    %278 = vector.load %arg4[%c1_172, %c4_173, %c0_174, %c0_175] : memref<2x8x32x32xf32, #tpu.memory_space<vmem>>, vector<1x1x32x32xf32>
    %279 = vector.shape_cast %278 : vector<1x1x32x32xf32> to vector<32x32xf32>
    %c1_176 = arith.constant 1 : index
    %c4_177 = arith.constant 4 : index
    %c0_178 = arith.constant 0 : index
    %280 = vector.load %arg7[%c1_176, %c4_177, %c0_178] : memref<2x16x64xf32, #tpu.memory_space<vmem>>, vector<1x1x32xf32>
    %281 = vector.shape_cast %280 : vector<1x1x32xf32> to vector<1x32xf32>
    %cst_179 = arith.constant dense<0.000000e+00> : vector<16x32xf32>
    %282 = tpu.matmul %277, %279, %cst_179 {dimension_numbers = #tpu.dot_dimension_numbers<[1], [0], [0], [1], [0, 0, 1, 1], [], []>} : vector<16x32xf32>, vector<32x32xf32>, vector<16x32xf32> -> vector<16x32xf32>
    %283 = vector.broadcast %281 : vector<1x32xf32> to vector<16x32xf32>
    %284 = arith.addf %282, %283 : vector<16x32xf32>
    %c1_180 = arith.constant 1 : index
    %c5_181 = arith.constant 5 : index
    %c0_182 = arith.constant 0 : index
    %c0_183 = arith.constant 0 : index
    %285 = vector.load %arg4[%c1_180, %c5_181, %c0_182, %c0_183] : memref<2x8x32x32xf32, #tpu.memory_space<vmem>>, vector<1x1x32x32xf32>
    %286 = vector.shape_cast %285 : vector<1x1x32x32xf32> to vector<32x32xf32>
    %c1_184 = arith.constant 1 : index
    %c5_185 = arith.constant 5 : index
    %c0_186 = arith.constant 0 : index
    %287 = vector.load %arg7[%c1_184, %c5_185, %c0_186] : memref<2x16x64xf32, #tpu.memory_space<vmem>>, vector<1x1x32xf32>
    %288 = vector.shape_cast %287 : vector<1x1x32xf32> to vector<1x32xf32>
    %cst_187 = arith.constant dense<0.000000e+00> : vector<16x32xf32>
    %289 = tpu.matmul %1, %286, %cst_187 {dimension_numbers = #tpu.dot_dimension_numbers<[1], [0], [0], [1], [0, 0, 1, 1], [], []>} : vector<16x32xf32>, vector<32x32xf32>, vector<16x32xf32> -> vector<16x32xf32>
    %290 = vector.broadcast %288 : vector<1x32xf32> to vector<16x32xf32>
    %291 = arith.addf %289, %290 : vector<16x32xf32>
    %c1_188 = arith.constant 1 : index
    %c6_189 = arith.constant 6 : index
    %c0_190 = arith.constant 0 : index
    %c0_191 = arith.constant 0 : index
    %292 = vector.load %arg4[%c1_188, %c6_189, %c0_190, %c0_191] : memref<2x8x32x32xf32, #tpu.memory_space<vmem>>, vector<1x1x32x32xf32>
    %293 = vector.shape_cast %292 : vector<1x1x32x32xf32> to vector<32x32xf32>
    %c1_192 = arith.constant 1 : index
    %c6_193 = arith.constant 6 : index
    %c0_194 = arith.constant 0 : index
    %294 = vector.load %arg7[%c1_192, %c6_193, %c0_194] : memref<2x16x64xf32, #tpu.memory_space<vmem>>, vector<1x1x32xf32>
    %295 = vector.shape_cast %294 : vector<1x1x32xf32> to vector<1x32xf32>
    %cst_195 = arith.constant dense<0.000000e+00> : vector<16x32xf32>
    %296 = tpu.matmul %1, %293, %cst_195 {dimension_numbers = #tpu.dot_dimension_numbers<[1], [0], [0], [1], [0, 0, 1, 1], [], []>} : vector<16x32xf32>, vector<32x32xf32>, vector<16x32xf32> -> vector<16x32xf32>
    %297 = vector.broadcast %295 : vector<1x32xf32> to vector<16x32xf32>
    %298 = arith.addf %296, %297 : vector<16x32xf32>
    %cst_196 = arith.constant dense<0.000000e+00> : vector<16x16xf32>
    %299 = tpu.matmul %284, %291, %cst_196 {dimension_numbers = #tpu.dot_dimension_numbers<[1], [1], [0], [0], [0, 0, 1, 0], [], []>} : vector<16x32xf32>, vector<16x32xf32>, vector<16x16xf32> -> vector<16x16xf32>
    %cst_197 = arith.constant 0.176776692 : f32
    %300 = vector.broadcast %cst_197 : f32 to vector<16x16xf32>
    %301 = arith.mulf %299, %300 : vector<16x16xf32>
    %302 = arith.addf %301, %3 : vector<16x16xf32>
    %cst_198 = arith.constant dense<0xFF800000> : vector<16xf32>
    %303 = vector.multi_reduction <maximumf>, %302, %cst_198 [1] : vector<16x16xf32> to vector<16xf32>
    %304 = vector.shape_cast %303 : vector<16xf32> to vector<16x1xf32>
    %305 = vector.broadcast %304 : vector<16x1xf32> to vector<16x16xf32>
    %306 = arith.subf %302, %305 : vector<16x16xf32>
    %307 = math.exp %306 : vector<16x16xf32>
    %cst_199 = arith.constant dense<0.000000e+00> : vector<16xf32>
    %308 = vector.multi_reduction <add>, %307, %cst_199 [1] : vector<16x16xf32> to vector<16xf32>
    %309 = vector.shape_cast %308 : vector<16xf32> to vector<16x1xf32>
    %310 = tpu.reciprocal %309 : vector<16x1xf32> -> vector<16x1xf32>
    %311 = vector.broadcast %310 : vector<16x1xf32> to vector<16x16xf32>
    %312 = arith.mulf %307, %311 : vector<16x16xf32>
    %cst_200 = arith.constant dense<0.000000e+00> : vector<16x32xf32>
    %313 = tpu.matmul %312, %298, %cst_200 {dimension_numbers = #tpu.dot_dimension_numbers<[1], [0], [0], [1], [0, 0, 1, 1], [], []>} : vector<16x16xf32>, vector<16x32xf32>, vector<16x32xf32> -> vector<16x32xf32>
    %c1_201 = arith.constant 1 : index
    %c7_202 = arith.constant 7 : index
    %c0_203 = arith.constant 0 : index
    %c0_204 = arith.constant 0 : index
    %314 = vector.load %arg4[%c1_201, %c7_202, %c0_203, %c0_204] : memref<2x8x32x32xf32, #tpu.memory_space<vmem>>, vector<1x1x32x32xf32>
    %315 = vector.shape_cast %314 : vector<1x1x32x32xf32> to vector<32x32xf32>
    %c1_205 = arith.constant 1 : index
    %c7_206 = arith.constant 7 : index
    %c0_207 = arith.constant 0 : index
    %316 = vector.load %arg7[%c1_205, %c7_206, %c0_207] : memref<2x16x64xf32, #tpu.memory_space<vmem>>, vector<1x1x32xf32>
    %317 = vector.shape_cast %316 : vector<1x1x32xf32> to vector<1x32xf32>
    %cst_208 = arith.constant dense<0.000000e+00> : vector<16x32xf32>
    %318 = tpu.matmul %313, %315, %cst_208 {dimension_numbers = #tpu.dot_dimension_numbers<[1], [0], [0], [1], [0, 0, 1, 1], [], []>} : vector<16x32xf32>, vector<32x32xf32>, vector<16x32xf32> -> vector<16x32xf32>
    %319 = vector.broadcast %317 : vector<1x32xf32> to vector<16x32xf32>
    %320 = arith.addf %318, %319 : vector<16x32xf32>
    %321 = arith.addf %252, %320 : vector<16x32xf32>
    %c1_209 = arith.constant 1 : index
    %c14_210 = arith.constant 14 : index
    %c0_211 = arith.constant 0 : index
    %322 = vector.load %arg7[%c1_209, %c14_210, %c0_211] : memref<2x16x64xf32, #tpu.memory_space<vmem>>, vector<1x1x32xf32>
    %323 = vector.shape_cast %322 : vector<1x1x32xf32> to vector<1x32xf32>
    %c1_212 = arith.constant 1 : index
    %c15_213 = arith.constant 15 : index
    %c0_214 = arith.constant 0 : index
    %324 = vector.load %arg7[%c1_212, %c15_213, %c0_214] : memref<2x16x64xf32, #tpu.memory_space<vmem>>, vector<1x1x32xf32>
    %325 = vector.shape_cast %324 : vector<1x1x32xf32> to vector<1x32xf32>
    %cst_215 = arith.constant dense<0.000000e+00> : vector<16xf32>
    %326 = vector.multi_reduction <add>, %321, %cst_215 [1] : vector<16x32xf32> to vector<16xf32>
    %327 = vector.shape_cast %326 : vector<16xf32> to vector<16x1xf32>
    %cst_216 = arith.constant 3.200000e+01 : f32
    %328 = vector.broadcast %cst_216 : f32 to vector<16x1xf32>
    %329 = arith.divf %327, %328 : vector<16x1xf32>
    %330 = vector.broadcast %329 : vector<16x1xf32> to vector<16x32xf32>
    %331 = arith.subf %321, %330 : vector<16x32xf32>
    %332 = arith.mulf %331, %331 : vector<16x32xf32>
    %cst_217 = arith.constant dense<0.000000e+00> : vector<16xf32>
    %333 = vector.multi_reduction <add>, %332, %cst_217 [1] : vector<16x32xf32> to vector<16xf32>
    %334 = vector.shape_cast %333 : vector<16xf32> to vector<16x1xf32>
    %cst_218 = arith.constant 0.0322580636 : f32
    %335 = vector.broadcast %cst_218 : f32 to vector<16x1xf32>
    %336 = arith.mulf %334, %335 : vector<16x1xf32>
    %337 = math.sqrt %336 : vector<16x1xf32>
    %cst_219 = arith.constant 9.99999997E-7 : f32
    %338 = vector.broadcast %cst_219 : f32 to vector<16x1xf32>
    %339 = arith.addf %337, %338 : vector<16x1xf32>
    %340 = tpu.reciprocal %339 : vector<16x1xf32> -> vector<16x1xf32>
    %341 = vector.broadcast %323 : vector<1x32xf32> to vector<16x32xf32>
    %342 = arith.mulf %341, %331 : vector<16x32xf32>
    %343 = vector.broadcast %340 : vector<16x1xf32> to vector<16x32xf32>
    %344 = arith.mulf %342, %343 : vector<16x32xf32>
    %345 = vector.broadcast %325 : vector<1x32xf32> to vector<16x32xf32>
    %346 = arith.addf %344, %345 : vector<16x32xf32>
    %c1_220 = arith.constant 1 : index
    %c0_221 = arith.constant 0 : index
    %c0_222 = arith.constant 0 : index
    %347 = vector.load %arg5[%c1_220, %c0_221, %c0_222] : memref<2x32x64xf32, #tpu.memory_space<vmem>>, vector<1x32x64xf32>
    %348 = vector.shape_cast %347 : vector<1x32x64xf32> to vector<32x64xf32>
    %cst_223 = arith.constant dense<0.000000e+00> : vector<16x64xf32>
    %349 = tpu.matmul %346, %348, %cst_223 {dimension_numbers = #tpu.dot_dimension_numbers<[1], [0], [0], [1], [0, 0, 1, 1], [], []>} : vector<16x32xf32>, vector<32x64xf32>, vector<16x64xf32> -> vector<16x64xf32>
    %c1_224 = arith.constant 1 : index
    %c9_225 = arith.constant 9 : index
    %c0_226 = arith.constant 0 : index
    %350 = vector.load %arg7[%c1_224, %c9_225, %c0_226] : memref<2x16x64xf32, #tpu.memory_space<vmem>>, vector<1x1x64xf32>
    %351 = vector.shape_cast %350 : vector<1x1x64xf32> to vector<1x64xf32>
    %352 = vector.broadcast %351 : vector<1x64xf32> to vector<16x64xf32>
    %353 = arith.addf %349, %352 : vector<16x64xf32>
    %cst_227 = arith.constant 0.000000e+00 : f32
    %354 = vector.broadcast %cst_227 : f32 to vector<16x64xf32>
    %355 = arith.maximumf %353, %354 : vector<16x64xf32>
    %c1_228 = arith.constant 1 : index
    %c0_229 = arith.constant 0 : index
    %c0_230 = arith.constant 0 : index
    %356 = vector.load %arg6[%c1_228, %c0_229, %c0_230] : memref<2x64x32xf32, #tpu.memory_space<vmem>>, vector<1x64x32xf32>
    %357 = vector.shape_cast %356 : vector<1x64x32xf32> to vector<64x32xf32>
    %cst_231 = arith.constant dense<0.000000e+00> : vector<16x32xf32>
    %358 = tpu.matmul %355, %357, %cst_231 {dimension_numbers = #tpu.dot_dimension_numbers<[1], [0], [0], [1], [0, 0, 1, 1], [], []>} : vector<16x64xf32>, vector<64x32xf32>, vector<16x32xf32> -> vector<16x32xf32>
    %c1_232 = arith.constant 1 : index
    %c8_233 = arith.constant 8 : index
    %c0_234 = arith.constant 0 : index
    %359 = vector.load %arg7[%c1_232, %c8_233, %c0_234] : memref<2x16x64xf32, #tpu.memory_space<vmem>>, vector<1x1x32xf32>
    %360 = vector.shape_cast %359 : vector<1x1x32xf32> to vector<1x32xf32>
    %361 = vector.broadcast %360 : vector<1x32xf32> to vector<16x32xf32>
    %362 = arith.addf %358, %361 : vector<16x32xf32>
    %363 = arith.addf %321, %362 : vector<16x32xf32>
    %c0_235 = arith.constant 0 : index
    %c0_236 = arith.constant 0 : index
    %364 = vector.load %arg8[%c0_235, %c0_236] : memref<2x32xf32, #tpu.memory_space<vmem>>, vector<1x32xf32>
    %c1_237 = arith.constant 1 : index
    %c0_238 = arith.constant 0 : index
    %365 = vector.load %arg8[%c1_237, %c0_238] : memref<2x32xf32, #tpu.memory_space<vmem>>, vector<1x32xf32>
    %cst_239 = arith.constant dense<0.000000e+00> : vector<16xf32>
    %366 = vector.multi_reduction <add>, %363, %cst_239 [1] : vector<16x32xf32> to vector<16xf32>
    %367 = vector.shape_cast %366 : vector<16xf32> to vector<16x1xf32>
    %cst_240 = arith.constant 3.200000e+01 : f32
    %368 = vector.broadcast %cst_240 : f32 to vector<16x1xf32>
    %369 = arith.divf %367, %368 : vector<16x1xf32>
    %370 = vector.broadcast %369 : vector<16x1xf32> to vector<16x32xf32>
    %371 = arith.subf %363, %370 : vector<16x32xf32>
    %372 = arith.mulf %371, %371 : vector<16x32xf32>
    %cst_241 = arith.constant dense<0.000000e+00> : vector<16xf32>
    %373 = vector.multi_reduction <add>, %372, %cst_241 [1] : vector<16x32xf32> to vector<16xf32>
    %374 = vector.shape_cast %373 : vector<16xf32> to vector<16x1xf32>
    %cst_242 = arith.constant 0.0322580636 : f32
    %375 = vector.broadcast %cst_242 : f32 to vector<16x1xf32>
    %376 = arith.mulf %374, %375 : vector<16x1xf32>
    %377 = math.sqrt %376 : vector<16x1xf32>
    %cst_243 = arith.constant 9.99999997E-7 : f32
    %378 = vector.broadcast %cst_243 : f32 to vector<16x1xf32>
    %379 = arith.addf %377, %378 : vector<16x1xf32>
    %380 = tpu.reciprocal %379 : vector<16x1xf32> -> vector<16x1xf32>
    %381 = vector.broadcast %364 : vector<1x32xf32> to vector<16x32xf32>
    %382 = arith.mulf %381, %371 : vector<16x32xf32>
    %383 = vector.broadcast %380 : vector<16x1xf32> to vector<16x32xf32>
    %384 = arith.mulf %382, %383 : vector<16x32xf32>
    %385 = vector.broadcast %365 : vector<1x32xf32> to vector<16x32xf32>
    %386 = arith.addf %384, %385 : vector<16x32xf32>
    %c0_244 = arith.constant 0 : index
    %c0_245 = arith.constant 0 : index
    %387 = vector.load %arg9[%c0_244, %c0_245] : memref<16x32xf32, #tpu.memory_space<vmem>>, vector<16x32xf32>
    tpu.vector_store %arg9[%c0_244, %c0_245], %386 {strides = array<i32>} : memref<16x32xf32, #tpu.memory_space<vmem>>, vector<16x32xf32>,
    return
  }
}

</mosaic_0001>

<bundles_post_ra>
// kernel: tile.8
= control target key start
LH: loop header
LB: loop body
LE: loop exit
PB: predicated region body
PF: predicated region fallthrough
CT: control target
= control target key end

     0   :  { %v141_v10 = vmov 0   ;;  %s206_s0 = inlined_call_operand.vmem [shape: pred[8,8], index: 0, kind: input, shape index: {}]   ;;  %s207_s1 = inlined_call_operand.vmem [shape: pred[2,8,2,8], index: 1, kind: output, shape index: {}]  }
   0x1   :  { %v4_v0 = vld [vmem:[%s206_s0] ss:$0 sm:$0xff]  ;;  %v127_v1 = vld [vmem:[%s206_s0 + $0x1] ss:$0 sm:$0xff] }
   0x2   :  { %v7_v2 = vand.u32 255, %v4_v0  ;;  %v19_v3 = vshra.s32 %v4_v0, 8  ;;  %v33_v4 = vshra.s32 %v4_v0, 16  ;;  %v124_v5 = vshrl.u32 %v4_v0, 24 }
   0x3   :  { %v63_v6 = vand.u32 255, %v127_v1  ;;  %v77_v7 = vshra.s32 %v127_v1, 8  ;;  %v92_v8 = vshra.s32 %v127_v1, 16  ;;  %v137_v9 = vshrl.u32 %v127_v1, 24 }
   0x4   :  { %v8_v11 = vpack.c.b16 %v141_v10, %v7_v2  ;;  %v20_v12 = vand.u32 255, %v19_v3  ;;  %v34_v13 = vand.u32 255, %v33_v4  ;;  %v50_v14 = vpack.c.b16 %v141_v10, %v124_v5 }
   0x5   :  { %v65_v15 = vpack.c.b16 %v141_v10, %v63_v6  ;;  %v78_v16 = vand.u32 255, %v77_v7  ;;  %v93_v17 = vand.u32 255, %v92_v8  ;;  %v110_v18 = vpack.c.b16 %v141_v10, %v137_v9 }
   0x6   :  { %v9_v19 = vpack.c.b8 %v141_v10, %v8_v11  ;;  %v22_v20 = vpack.c.b16 %v141_v10, %v20_v12  ;;  %v36_v21 = vpack.c.b16 %v141_v10, %v34_v13  ;;  %v51_v22 = vpack.c.b8 %v141_v10, %v50_v14 }
   0x7   :  { %v66_v23 = vpack.c.b8 %v141_v10, %v65_v15  ;;  %v80_v24 = vpack.c.b16 %v141_v10, %v78_v16  ;;  %v95_v25 = vpack.c.b16 %v141_v10, %v93_v17  ;;  %v111_v26 = vpack.c.b8 %v141_v10, %v110_v18 }
   0x8   :  { %11 = vst [vmem:[%s207_s1] sm:$0x1] %v9_v19  ;;  %119 = vst [vmem:[%s207_s1 + $0x8] sm:$0x1] %v9_v19  ;;  %v23_v27 = vpack.c.b8 %v141_v10, %v22_v20  ;;  %v37_v28 = vpack.c.b8 %v141_v10, %v36_v21 }
   0x9   :  { %125 = vst [vmem:[%s207_s1 + $0x3] sm:$0x1] %v51_v22  ;;  %126 = vst [vmem:[%s207_s1 + $0xb] sm:$0x1] %v51_v22  ;;  %v81_v29 = vpack.c.b8 %v141_v10, %v80_v24  ;;  %v96_v30 = vpack.c.b8 %v141_v10, %v95_v25 }
   0xa   :  { %128 = vst [vmem:[%s207_s1 + $0x4] sm:$0x1] %v66_v23  ;;  %129 = vst [vmem:[%s207_s1 + $0xc] sm:$0x1] %v66_v23 }
   0xb   :  { %138 = vst [vmem:[%s207_s1 + $0x7] sm:$0x1] %v111_v26  ;;  %139 = vst [vmem:[%s207_s1 + $0xf] sm:$0x1] %v111_v26 }
   0xc   :  { %120 = vst [vmem:[%s207_s1 + $0x1] sm:$0x1] %v23_v27  ;;  %121 = vst [vmem:[%s207_s1 + $0x9] sm:$0x1] %v23_v27 }
   0xd   :  { %122 = vst [vmem:[%s207_s1 + $0x2] sm:$0x1] %v37_v28  ;;  %123 = vst [vmem:[%s207_s1 + $0xa] sm:$0x1] %v37_v28 }
   0xe   :  { %131 = vst [vmem:[%s207_s1 + $0x5] sm:$0x1] %v81_v29  ;;  %132 = vst [vmem:[%s207_s1 + $0xd] sm:$0x1] %v81_v29 }
   0xf   :  { %134 = vst [vmem:[%s207_s1 + $0x6] sm:$0x1] %v96_v30  ;;  %135 = vst [vmem:[%s207_s1 + $0xe] sm:$0x1] %v96_v30 }

// kernel: tile.9
= control target key start
LH: loop header
LB: loop body
LE: loop exit
PB: predicated region body
PF: predicated region fallthrough
CT: control target
= control target key end

     0   :  { %vm259_vm0 = vcmask 1047556   ;;  %vm261_vm1 = vcmask 64512   ;;  %vm280_vm2 = vcmask 130112   ;;  %v342_v47 = vmov 0   ;;  %s413_s0 = inlined_call_operand.vmem [shape: pred[2,8,2,8], index: 0, kind: input, shape index: {}]   ;;  %s414_s1 = inlined_call_operand.vmem [shape: pred[16,16], index: 1, kind: output, shape index: {}]  }
   0x1   :  { %v331_v0 = vld [vmem:[%s413_s0 + $0x7] sm:$0x1]  ;;  %v332_v1 = vld [vmem:[%s413_s0 + $0x6] sm:$0x1]  ;;  %v333_v2 = vld [vmem:[%s413_s0 + $0x5] sm:$0x1] }
   0x2   :  { %v143_v3 = vunpack.c.0.s8 %v331_v0  ;;  %v159_v4 = vunpack.c.0.s8 %v332_v1  ;;  %v175_v5 = vunpack.c.0.s8 %v333_v2  ;;  %v334_v6 = vld [vmem:[%s413_s0 + $0x4] sm:$0x1]  ;;  %v335_v7 = vld [vmem:[%s413_s0 + $0x3] sm:$0x1]  ;;  %v336_v8 = vld [vmem:[%s413_s0 + $0x2] sm:$0x1] }
   0x3   :  { %v191_v9 = vunpack.c.0.s8 %v334_v6  ;;  %v207_v10 = vunpack.c.0.s8 %v335_v7  ;;  %v223_v11 = vunpack.c.0.s8 %v336_v8  ;;  %v337_v12 = vld [vmem:[%s413_s0 + $0x1] sm:$0x1]  ;;  %v251_v13 = vld [vmem:[%s413_s0] sm:$0x1]  ;;  %v323_v16 = vld [vmem:[%s413_s0 + $0xf] sm:$0x1] }
   0x4   :  { %148 = vst [vmem:[#allocation1 + $0x38] sm:$0xf] %v143_v3  ;;  %164 = vst [vmem:[#allocation1 + $0x30] sm:$0xf] %v159_v4  ;;  %v238_v14 = vunpack.c.0.s8 %v337_v12  ;;  %v252_v15 = vunpack.c.0.s8 %v251_v13  ;;  %v324_v17 = vld [vmem:[%s413_s0 + $0xe] sm:$0x1]  ;;  %v15_v19 = vunpack.c.0.s8 %v323_v16 }
   0x5   :  { %180 = vst [vmem:[#allocation1 + $0x28] sm:$0xf] %v175_v5  ;;  %v325_v18 = vld [vmem:[%s413_s0 + $0xd] sm:$0x1]  ;;  %196 = vst [vmem:[#allocation1 + $0x20] sm:$0xf] %v191_v9  ;;  %v31_v20 = vunpack.c.0.s8 %v324_v17 }
   0x6   :  { %212 = vst [vmem:[#allocation1 + $0x18] sm:$0xf] %v207_v10  ;;  %228 = vst [vmem:[#allocation1 + $0x10] sm:$0xf] %v223_v11  ;;  %v47_v21 = vunpack.c.0.s8 %v325_v18  ;;  %v326_v22 = vld [vmem:[%s413_s0 + $0xc] sm:$0x1] }
   0x7   :  { %v327_v23 = vld [vmem:[%s413_s0 + $0xb] sm:$0x1]  ;;  %v328_v24 = vld [vmem:[%s413_s0 + $0xa] sm:$0x1]  ;;  %243 = vst [vmem:[#allocation1 + $0x8] sm:$0xf] %v238_v14  ;;  %v63_v25 = vunpack.c.0.s8 %v326_v22 }
   0x8   :  { %256 = vst [vmem:[#allocation1] sm:$0xf] %v252_v15  ;;  %v79_v26 = vunpack.c.0.s8 %v327_v23  ;;  %v95_v27 = vunpack.c.0.s8 %v328_v24  ;;  %v329_v28 = vld [vmem:[%s413_s0 + $0x9] sm:$0x1]  ;;  %v330_v29 = vld [vmem:[%s413_s0 + $0x8] sm:$0x1] }
   0x9   :  { %20 = vst [vmem:[#allocation1 + $0x78] sm:$0xf] %v15_v19  ;;  %36 = vst [vmem:[#allocation1 + $0x70] sm:$0xf] %v31_v20  ;;  %v111_v30 = vunpack.c.0.s8 %v329_v28  ;;  %v127_v31 = vunpack.c.0.s8 %v330_v29  ;;  %s341_s0 = smov 8  }
   0xa   :  { %52 = vst [vmem:[#allocation1 + $0x68] sm:$0xf] %v47_v21  ;;  %68 = vst [vmem:[#allocation1 + $0x60] sm:$0xf] %v63_v25 }
   0xb   :  { %84 = vst [vmem:[#allocation1 + $0x58] sm:$0xf] %v79_v26  ;;  %100 = vst [vmem:[#allocation1 + $0x50] sm:$0xf] %v95_v27 }
   0xc   :  { %116 = vst [vmem:[#allocation1 + $0x48] sm:$0xf] %v111_v30  ;;  %132 = vst [vmem:[#allocation1 + $0x40] sm:$0xf] %v127_v31 }
   0xd   :  { %v275_v32 = vld [vmem:[#allocation1 + $0x1] ss:$8 sm:$0xf0]   ;;  %v258_v33 = vld [vmem:[#allocation1] ss:$8 sm:$0xf0]  }
   0xf   :  { %v273_v34 = vld [vmem:[#allocation1 + $0x1] ss:$8 sm:$0xf]   ;;  %v257_v35 = vld [vmem:[#allocation1] ss:$8 sm:$0xf]  }
  0x10   :  { %v277_v36 = vsel %vm259_vm0, %v275_v32, %v273_v34  ;;  %v260_v37 = vsel %vm259_vm0, %v258_v33, %v257_v35 }
  0x11   :  { %278 = vrot.lane.b32.xlu0 %v277_v36, %s341_s0  ;;  %v285_v38 = vld [vmem:[#allocation1 + $0x41] ss:$8 sm:$0xf0]   ;;  %262 = vst.msk [vmem:[#allocation0] sm:$0xff] %vm261_vm1, %v260_v37  }
  0x12   :  { %v266_v39 = vld [vmem:[#allocation1 + $0x40] ss:$8 sm:$0xf0]  }
  0x13   :  { %v283_v40 = vld [vmem:[#allocation1 + $0x41] ss:$8 sm:$0xf]   ;;  %v264_v41 = vld [vmem:[#allocation1 + $0x40] ss:$8 sm:$0xf]  }
  0x14   :  { %v287_v42 = vsel %vm259_vm0, %v285_v38, %v283_v40  ;;  %v268_v43 = vsel %vm259_vm0, %v266_v39, %v264_v41 }
  0x15   :  { %271 = vst.msk [vmem:[#allocation0 + $0x8] sm:$0xff] %vm261_vm1, %v268_v43   ;;  %288 = vrot.lane.b32.xlu0 %v287_v42, %s341_s0 }
  0x83   :  { %v279_v44 = vpop.permute.xlu0 %278  }
  0x84   :  { %281 = vst.msk [vmem:[#allocation0] sm:$0xff] %vm280_vm2, %v279_v44  }
  0x87   :  { %v289_v45 = vpop.permute.xlu0 %288  }
  0x88   :  { %292 = vst.msk [vmem:[#allocation0 + $0x8] sm:$0xff] %vm280_vm2, %v289_v45  }
  0x8b   :  { %v297_v46 = vld [vmem:[#allocation0] sm:$0xff] }
  0x8c   :  { %v299_v48 = vpack.c.b16 %v342_v47, %v297_v46 }
  0x8e   :  { %v300_v49 = vpack.c.b8 %v342_v47, %v299_v48 }
  0x8f   :  { %v303_v50 = vld [vmem:[#allocation0 + $0x8] sm:$0xff] }
  0x90   :  { %301 = vst [vmem:[%s414_s1] sm:$0x3] %v300_v49  ;;  %v306_v51 = vpack.c.b16 %v342_v47, %v303_v50 }
  0x92   :  { %v307_v52 = vpack.c.b8 %v342_v47, %v306_v51 }
  0x94   :  { %338 = vst [vmem:[%s414_s1 + $0x2] sm:$0x3] %v307_v52 }

// kernel: decoder_forward.1
= control target key start
LH: loop header
LB: loop body
LE: loop exit
PB: predicated region body
PF: predicated region fallthrough
CT: control target
= control target key end

     0   :  { %14 = vsyncpa [#allocation3], 0  ;;  %s4460_s0 = inlined_call_operand.vmem [shape: f32[16,32], index: 0, kind: input, shape index: {}]   ;;  %s4461_s1 = inlined_call_operand.vmem [shape: f32[16,32], index: 1, kind: input, shape index: {}]   ;;  %s4462_s2 = inlined_call_operand.vmem [shape: f32[16,16], index: 2, kind: input, shape index: {}]   ;;  %s4463_s3 = inlined_call_operand.vmem [shape: f32[16,16], index: 3, kind: input, shape index: {}]   ;;  %s4464_s4 = inlined_call_operand.hbm [shape: f32[2,8,32,32], index: 4, kind: input, shape index: {}]   ;;  %s4465_s5 = inlined_call_operand.vmem [shape: f32[2,32,64], index: 5, kind: input, shape index: {}]   ;;  %s4466_s6 = inlined_call_operand.vmem [shape: f32[2,64,32], index: 6, kind: input, shape index: {}]   ;;  %s4467_s7 = inlined_call_operand.vmem [shape: f32[2,16,64], index: 7, kind: input, shape index: {}]   ;;  %s4468_s8 = inlined_call_operand.vmem [shape: f32[2,32], index: 8, kind: input, shape index: {}]   ;;  %s4469_s9 = inlined_call_operand.hbm [shape: f32[16,32], index: 9, kind: output, shape index: {}]  }
   0x1   :  { %15 = vsyncpa [#allocation4], 0  ;;  %s3966_s30 = smov [#allocation2]   ;;  %s3918_s13 = scalar_lea.hbm %s4464_s4, 8192 }
   0x2   :  { %s29_s10 = sshll.u32 %s3966_s30, 4  ;;  %p3919_p0 = scmp.ne.s32.totalorder %s4464_s4, %s3918_s13  ;;  %s30_s10 = int_to_ptr.vmem [resolvable:$true] %s29_s10 }
   0x3   :  { %p3922_p1 = scmp.lt.u32.totalorder %s3918_s13, %s4464_s4 }
   0x5   :  { %p3924_p2 = pnand %p3922_p1, %p3919_p0 }
   0x7   :  { %3927 = shalt.err (!%p3924_p2)
}
   0x8   :  { %s3928_s18 = scalar_lea.vmem %s30_s10, 8192  ;;  %p3933_p4 = scmp.lt.s32.totalorder %s30_s10, %s30_s10 }
   0x9   :  { %p3929_p3 = scmp.ne.s32.totalorder %s30_s10, %s3928_s18  ;;  %p3934_p5 = scmp.lt.s32.totalorder %s3928_s18, %s3928_s18 }
   0xb   :  { %p3935_p6 = por %p3934_p5, %p3933_p4 }
   0xd   :  { %p3936_p7 = pnand %p3935_p6, %p3929_p3 }
   0xf   :  { %3939 = shalt.err (!%p3936_p7)
}
  0x10   :  { %s3967_s19 = smov 128   ;;  %s3968_s20 = smov 8  }
  0x11   :  { %35 = dma.hbm_to_vmem [thread:$0]  %s4464_s4, 8192, %s30_s10, [#allocation3], %s3967_s19, %s3967_s19, %s3968_s20  }
  0x12   :  { %3962 = dma.done.wait [#allocation3], 8192  }
  0x13   :  { %3963 = vsyncadd [#allocation3], 4294959104  ;;  %vm57_vm0 = vcmask 261120   ;;  %v4038_v0 = vld [vmem:[%s4460_s0] sm:$0xff]  ;;  %v4043_v1 = vld [vmem:[%s4460_s0 + $0x8] sm:$0xff]  ;;  %vm462_vm6 = vcmask 130048  }
  0x14   :  { %v58_v2 = vsel %vm57_vm0, %v4038_v0, 0.0  ;;  %v61_v3 = vsel %vm57_vm0, %v4043_v1, 0.0  ;;  %v111_v14 = vld [vmem:[#allocation2] sm:$0xff]  ;;  %v112_v15 = vld [vmem:[#allocation2 + $0x8] sm:$0xff]  ;;  %v113_v19 = vld [vmem:[#allocation2 + $0x10] sm:$0xff]  ;;  %vm1426_vm15 = vcmask 523264  }
  0x15   :  { %59 = vadd.xlane.f32.xlu0 %v58_v2  ;;  %v287_v16 = vld [vmem:[#allocation2 + $0x40] sm:$0xff]  ;;  %v3610_v17 = vpack.c.bf16 %v112_v15, %v111_v14  ;;  %v288_v18 = vld [vmem:[#allocation2 + $0x48] sm:$0xff]  ;;  %v114_v20 = vld [vmem:[#allocation2 + $0x18] sm:$0xff]  ;;  %s3969_s10 = smov [#allocation5]  }
  0x16   :  { %v3626_v21 = vpack.c.bf16 %v288_v18, %v287_v16  ;;  %v3614_v22 = vpack.c.bf16 %v114_v20, %v113_v19  ;;  %v289_v23 = vld [vmem:[#allocation2 + $0x50] sm:$0xff]  ;;  %v290_v24 = vld [vmem:[#allocation2 + $0x58] sm:$0xff]  ;;  %v202_v26 = vld [vmem:[#allocation2 + $0x20] sm:$0xff]  ;;  %s3020_s11 = sshll.u32 %s3969_s10, 4  ;;  %s3021_s11 = int_to_ptr.vmem [resolvable:$true] %s3020_s11 }
  0x17   :  { %3611 = vmatprep.subr.bf16.mxu1 %v3610_v17  ;;  %v3630_v25 = vpack.c.bf16 %v290_v24, %v289_v23  ;;  %v203_v27 = vld [vmem:[#allocation2 + $0x28] sm:$0xff]  ;;  %v204_v53 = vld [vmem:[#allocation2 + $0x30] sm:$0xff]  ;;  %v205_v54 = vld [vmem:[#allocation2 + $0x38] sm:$0xff]  ;;  %s3940_s12 = scalar_lea.vmem %s3021_s11, 256  ;;  %p3945_p9 = scmp.lt.s32.totalorder %s3021_s11, %s3021_s11 }
  0x18   :  { %3613 = vmatpush3.bf16.msra.mxu1 %v3610_v17  ;;  %3627 = vmatprep.subr.bf16.mxu0 %v3626_v21  ;;  %v3618_v28 = vpack.c.bf16 %v203_v27, %v202_v26  ;;  %v3032_v45 = vld [vmem:[%s4467_s7 + $0xa] ss:$0 sm:$0xff]  ;;  %v3033_v48 = vld [vmem:[%s4467_s7 + $0xb] ss:$0 sm:$0xff]  ;;  %v3622_v57 = vpack.c.bf16 %v205_v54, %v204_v53  ;;  %v3040_v58 = vld [vmem:[%s4467_s7 + $0x2] ss:$0 sm:$0xff]  ;;  %p3941_p8 = scmp.ne.s32.totalorder %s3021_s11, %s3940_s12  ;;  %p3946_p10 = scmp.lt.s32.totalorder %s3940_s12, %s3940_s12 }
  0x19   :  { %62 = vadd.xlane.f32.xlu0 %v61_v3  ;;  %3629 = vmatpush3.bf16.msra.mxu0 %v3626_v21  ;;  %v3034_v59 = vld [vmem:[%s4467_s7] ss:$0 sm:$0xff]  ;;  %vm4077_vm5 = vmpackc.low %vm57_vm0, %vm57_vm0  ;;  %v4089_v15 = vld [vmem:[%s4462_s2 + $0x8] sm:$0xff] }
  0x1a   :  { %3615 = vmatprep.subr.bf16.mxu1 %v3614_v22  ;;  %3631 = vmatprep.subr.bf16.mxu0 %v3630_v25  ;;  %v4094_v18 = vld [vmem:[%s4462_s2] sm:$0xff]  ;;  %p3947_p11 = por %p3946_p10, %p3945_p9 }
  0x1c   :  { %3617 = vmatpush3.bf16.msra.mxu1 %v3614_v22  ;;  %p3948_p12 = pnand %p3947_p11, %p3941_p8 }
  0x1d   :  { %3633 = vmatpush3.bf16.msra.mxu0 %v3630_v25  ;;  %3619 = vmatprep.subr.bf16.mxu1 %v3618_v28 }
  0xa2   :  { %v60_v4 = vpop.xlane.xlu0 %59 }
  0xa3   :  { %v65_v5 = vmul.f32 0.03125, %v60_v4 }
  0xa5   :  { %v67_v6 = vsub.f32 %v4038_v0, %v65_v5 }
  0xa6   :  { %v63_v7 = vpop.xlane.xlu0 %62 }
  0xa7   :  { %v66_v8 = vmul.f32 0.03125, %v63_v7  ;;  %v69_v9 = vmul.f32 %v67_v6, %v67_v6  ;;  %v101_v46 = vmul.f32 %v3032_v45, %v67_v6  ;;  %v3037_v6 = vld [vmem:[%s4467_s7 + $0x1] ss:$0 sm:$0xff] }
  0xa9   :  { %v68_v10 = vsub.f32 %v4043_v1, %v66_v8  ;;  %v71_v11 = vsel %vm57_vm0, %v69_v9, 0.0 }
  0xaa   :  { %72 = vadd.xlane.f32.xlu1 %v71_v11 }
  0xab   :  { %v70_v12 = vmul.f32 %v68_v10, %v68_v10  ;;  %v102_v50 = vmul.f32 %v3032_v45, %v68_v10 }
  0xad   :  { %v74_v13 = vsel %vm57_vm0, %v70_v12, 0.0 }
  0xae   :  { %75 = vadd.xlane.f32.xlu1 %v74_v13 }
 0x137   :  { %v73_v29 = vpop.xlane.xlu1 %72 }
 0x138   :  { %v77_v30 = vmul.f32 0.032258064, %v73_v29 }
 0x13a   :  { %3830 = vrsqrt.f32 %v77_v30  ;;  %vm81_vm1 = vcmp.eq.f32.partialorder %v77_v30, inf  ;;  %v84_v35 = vand.u32 2147483648, %v77_v30  ;;  %vm83_vm2 = vcmp.eq.f32.partialorder %v77_v30, 0.0 }
 0x13b   :  { %v76_v31 = vpop.xlane.xlu1 %75 }
 0x13c   :  { %v78_v32 = vmul.f32 0.032258064, %v76_v31 }
 0x13e   :  { %3832 = vrsqrt.f32 %v78_v32  ;;  %vm88_vm3 = vcmp.eq.f32.partialorder %v78_v32, inf  ;;  %v91_v41 = vand.u32 2147483648, %v78_v32  ;;  %vm90_vm4 = vcmp.eq.f32.partialorder %v78_v32, 0.0 }
 0x144   :  { %v3831_v33 = vpop.eup %3830 }
 0x145   :  { %v80_v34 = vmul.f32 %v3831_v33, %v77_v30 }
 0x147   :  { %v82_v36 = vsel %vm81_vm1, %v77_v30, %v80_v34  ;;  %v567_v34 = vld [vmem:[#allocation2 + $0x60] sm:$0xff] }
 0x148   :  { %v3833_v37 = vpop.eup %3832  ;;  %v85_v38 = vsel %vm83_vm2, %v84_v35, %v82_v36  ;;  %v568_v35 = vld [vmem:[#allocation2 + $0x68] sm:$0xff]  ;;  %v569_v36 = vld [vmem:[#allocation2 + $0x70] sm:$0xff] }
 0x149   :  { %v87_v39 = vmul.f32 %v3833_v37, %v78_v32  ;;  %v93_v40 = vadd.f32 1e-06, %v85_v38  ;;  %v3644_v37 = vpack.c.bf16 %v568_v35, %v567_v34  ;;  %v570_v38 = vld [vmem:[#allocation2 + $0x78] sm:$0xff] }
 0x14b   :  { %v89_v42 = vsel %vm88_vm3, %v78_v32, %v87_v39  ;;  %3834 = vrcp.f32 %v93_v40  ;;  %v3648_v39 = vpack.c.bf16 %v570_v38, %v569_v36  ;;  %v3052_v36 = vld [vmem:[%s4467_s7 + $0xc] ss:$0 sm:$0xff] }
 0x14c   :  { %v92_v43 = vsel %vm90_vm4, %v91_v41, %v89_v42 }
 0x14d   :  { %v94_v44 = vadd.f32 1e-06, %v92_v43 }
 0x14f   :  { %3836 = vrcp.f32 %v94_v44 }
 0x155   :  { %v3835_v47 = vpop.eup %3834 }
 0x156   :  { %v103_v49 = vmul.f32 %v3835_v47, %v101_v46 }
 0x158   :  { %v109_v51 = vadd.f32 %v3033_v48, %v103_v49 }
 0x159   :  { %v3837_v52 = vpop.eup %3836 }
 0x15a   :  { %v104_v55 = vmul.f32 %v3837_v52, %v102_v50  ;;  %3326 = vmatprep.mubr.msk.f32.mxu1 %vm57_vm0, %v109_v51  ;;  %3348 = vmatprep.mubr.msk.f32.mxu0 %vm57_vm0, %v109_v51 }
 0x15c   :  { %v110_v56 = vadd.f32 %v3033_v48, %v104_v55  ;;  %v3049_v48 = vld [vmem:[%s4467_s7 + $0x3] ss:$0 sm:$0xff] }
 0x15e   :  { %3327 = vmatmul.mubr.msk.f32.vlgmr.msra.gmra.mrb[0].mxu1 %vm57_vm0, %v110_v56  ;;  %3349 = vmatmul.mubr.msk.f32.vlgmr.msra.gmra.mrb[0].mxu0 %vm57_vm0, %v110_v56 }
 0x15f   :  { %3621 = vmatpush3.bf16.msra.mxu1 %v3618_v28  ;;  %3337 = vmatprep.mubr.msk.f32.mxu1 %vm57_vm0, %v109_v51 }
 0x160   :  { %3623 = vmatprep.subr.bf16.mxu1 %v3622_v57 }
 0x163   :  { %3625 = vmatpush3.bf16.msra.mxu1 %v3622_v57 }
 0x166   :  { %3338 = vmatmul.mubr.msk.f32.vlgmr.msra.gmra.mrb[2].mxu1 %vm57_vm0, %v110_v56 }
 0x231   :  { %v3328_v60 = vpop.f32.mrb[0].mxu1  ;;  %v3350_v61 = vpop.f32.mrb[0].mxu0 }
 0x232   :  { %v368_v62 = vadd.f32 %v3350_v61, %v3040_v58  ;;  %v192_v63 = vpop.f32.mrb[1].mxu1  ;;  %v362_v2 = vpop.f32.mrb[1].mxu0  ;;  %v198_v13 = vadd.f32 %v3328_v60, %v3034_v59 }
 0x233   :  { %v193_v3 = vadd.f32 %v3034_v59, %v192_v63  ;;  %v363_v4 = vadd.f32 %v3040_v58, %v362_v2 }
 0x235   :  { %v3640_v5 = vpack.c.bf16 %v368_v62, %v363_v4  ;;  %3355 = vmatprep.mubr.msk.f32.mxu1 %vm57_vm0, %v193_v3  ;;  %v805_v3 = vld [vmem:[#allocation2 + $0xa0] sm:$0xff]  ;;  %v806_v4 = vld [vmem:[#allocation2 + $0xa8] sm:$0xff] }
 0x237   :  { %3641 = vmatprep.subr.bf16.mxu0 %v3640_v5 }
 0x238   :  { %3643 = vmatpush3.bf16.msra.mxu0 %v3640_v5  ;;  %v3660_v5 = vpack.c.bf16 %v806_v4, %v805_v3 }
 0x239   :  { %v3339_v7 = vpop.f32.mrb[2].mxu1 }
 0x23a   :  { %v283_v8 = vadd.f32 %v3339_v7, %v3037_v6  ;;  %v277_v9 = vpop.f32.mrb[3].mxu1  ;;  %v808_v7 = vld [vmem:[#allocation2 + $0xb8] sm:$0xff] }
 0x23b   :  { %v278_v10 = vadd.f32 %v3037_v6, %v277_v9  ;;  %v807_v6 = vld [vmem:[#allocation2 + $0xb0] sm:$0xff]  ;;  %v4126_v9 = vld [vmem:[%s4461_s1] sm:$0xff] }
 0x23d   :  { %v3634_v12 = vpack.c.bf16 %v283_v8, %v278_v10  ;;  %v3664_v8 = vpack.c.bf16 %v808_v7, %v807_v6  ;;  %v714_v10 = vld [vmem:[#allocation2 + $0x80] sm:$0xff] }
 0x23f   :  { %3636 = vmatprep.subr.msk.bf16.mxu1 %vm4077_vm5, %v3634_v12 }
 0x240   :  { %3639 = vmatpush3.bf16.xpose.msk.msra.mxu1 %vm4077_vm5, %v3634_v12  ;;  %v715_v12 = vld [vmem:[#allocation2 + $0x88] sm:$0xff] }
 0x241   :  { %3645 = vmatprep.subr.bf16.mxu1 %v3644_v37 }
 0x247   :  { %3356 = vmatmul.mubr.msk.f32.vlgmr.msra.gmra.mrb[4].mxu1 %vm57_vm0, %v198_v13  ;;  %v716_v13 = vld [vmem:[#allocation2 + $0x90] sm:$0xff] }
 0x248   :  { %3647 = vmatpush3.bf16.msra.mxu1 %v3644_v37 }
 0x249   :  { %3649 = vmatprep.subr.bf16.mxu1 %v3648_v39 }
 0x24c   :  { %3651 = vmatpush3.bf16.msra.mxu1 %v3648_v39 }
 0x24d   :  { %3661 = vmatprep.subr.bf16.mxu1 %v3660_v5 }
 0x31a   :  { %v3357_v14 = vpop.f32.mrb[4].mxu1 }
 0x31b   :  { %v459_v16 = vmul.f32 0.17677669, %v3357_v14  ;;  %v449_v17 = vpop.f32.mrb[5].mxu1  ;;  %v717_v14 = vld [vmem:[#allocation2 + $0x98] sm:$0xff] }
 0x31c   :  { %v458_v19 = vmul.f32 0.17677669, %v449_v17  ;;  %v3656_v17 = vpack.c.bf16 %v717_v14, %v716_v13 }
 0x31d   :  { %v461_v20 = vadd.f32 %v459_v16, %v4089_v15  ;;  %v3652_v16 = vpack.c.bf16 %v715_v12, %v714_v10 }
 0x31e   :  { %v460_v21 = vadd.f32 %v458_v19, %v4094_v18  ;;  %v4133_v19 = vld [vmem:[%s4461_s1 + $0x8] sm:$0xff] }
 0x31f   :  { %v466_v22 = vsel %vm462_vm6, %v461_v20, -inf  ;;  %3653 = vmatprep.subr.bf16.mxu0 %v3652_v16 }
 0x320   :  { %467 = vmax.xlane.f32.xlu1 %v466_v22  ;;  %v463_v23 = vsel %vm462_vm6, %v460_v21, -inf }
 0x321   :  { %464 = vmax.xlane.f32.xlu0 %v463_v23 }
 0x3ad   :  { %v468_v24 = vpop.xlane.xlu1 %467 }
 0x3ae   :  { %v470_v25 = vsub.f32 %v461_v20, %v468_v24  ;;  %v465_v26 = vpop.xlane.xlu0 %464 }
 0x3af   :  { %v469_v27 = vsub.f32 %v460_v21, %v465_v26 }
 0x3b0   :  { %v473_v28 = vmul.f32 1.442695, %v470_v25 }
 0x3b1   :  { %v471_v29 = vmul.f32 1.442695, %v469_v27 }
 0x3b2   :  { %3838 = vpow2.f32 %v473_v28 }
 0x3b3   :  { %3840 = vpow2.f32 %v471_v29 }
 0x3bc   :  { %v3839_v30 = vpop.eup %3838 }
 0x3bd   :  { %v3841_v31 = vpop.eup %3840  ;;  %v478_v32 = vsel %vm462_vm6, %v3839_v30, 0.0 }
 0x3be   :  { %479 = vadd.xlane.f32.xlu1 %v478_v32  ;;  %v475_v33 = vsel %vm462_vm6, %v3841_v31, 0.0 }
 0x3bf   :  { %476 = vadd.xlane.f32.xlu0 %v475_v33 }
 0x44b   :  { %v480_v40 = vpop.xlane.xlu1 %479 }
 0x44c   :  { %3842 = vrcp.f32 %v480_v40  ;;  %v477_v41 = vpop.xlane.xlu0 %476 }
 0x44d   :  { %3844 = vrcp.f32 %v477_v41  ;;  %v3053_v41 = vld [vmem:[%s4467_s7 + $0xd] ss:$0 sm:$0xff] }
 0x456   :  { %v3843_v42 = vpop.eup %3842 }
 0x457   :  { %v3845_v43 = vpop.eup %3844  ;;  %v484_v45 = vmul.f32 %v3843_v42, %v3839_v30 }
 0x458   :  { %v483_v44 = vmul.f32 %v3845_v43, %v3841_v31 }
 0x45a   :  { %3362 = vmatprep.mubr.msk.f32.mxu0 %vm462_vm6, %v483_v44 }
 0x45b   :  { %3363 = vmatmul.mubr.msk.f32.vlgmr.msra.gmra.mrb[2].mxu0 %vm462_vm6, %v484_v45 }
 0x45c   :  { %3655 = vmatpush3.bf16.msra.mxu0 %v3652_v16 }
 0x45d   :  { %3657 = vmatprep.subr.bf16.mxu0 %v3656_v17 }
 0x460   :  { %3659 = vmatpush3.bf16.msra.mxu0 %v3656_v17 }
 0x52e   :  { %v3364_v46 = vpop.f32.mrb[2].mxu0 }
 0x52f   :  { %v557_v47 = vpop.f32.mrb[3].mxu0 }
 0x530   :  { %3373 = vmatprep.mubr.msk.f32.mxu1 %vm57_vm0, %v557_v47 }
 0x531   :  { %3374 = vmatmul.mubr.msk.f32.vlgmr.msra.gmra.mrb[6].mxu1 %vm57_vm0, %v3364_v46  ;;  %v3057_v46 = vld [vmem:[%s4467_s7 + $0x5] ss:$0 sm:$0xff] }
 0x532   :  { %3663 = vmatpush3.bf16.msra.mxu1 %v3660_v5  ;;  %3395 = vmatprep.mubr.msk.f32.mxu1 %vm57_vm0, %v4126_v9  ;;  %v4169_v5 = vld [vmem:[%s4463_s3] sm:$0xff] }
 0x533   :  { %3665 = vmatprep.subr.bf16.mxu1 %v3664_v8 }
 0x536   :  { %3667 = vmatpush3.bf16.msra.mxu1 %v3664_v8 }
 0x539   :  { %3396 = vmatmul.mubr.msk.f32.vlgmr.msra.gmra.mrb[8].mxu1 %vm57_vm0, %v4133_v19 }
 0x604   :  { %v3375_v49 = vpop.f32.mrb[6].mxu1 }
 0x605   :  { %v654_v50 = vadd.f32 %v3375_v49, %v3049_v48  ;;  %v648_v51 = vpop.f32.mrb[7].mxu1 }
 0x606   :  { %v649_v52 = vadd.f32 %v3049_v48, %v648_v51 }
 0x607   :  { %v4110_v53 = vadd.f32 %v654_v50, %v4043_v1 }
 0x608   :  { %v4113_v54 = vadd.f32 %v649_v52, %v4038_v0  ;;  %v3054_v52 = vld [vmem:[%s4467_s7 + $0x4] ss:$0 sm:$0xff] }
 0x609   :  { %v664_v55 = vsel %vm57_vm0, %v4110_v53, 0.0 }
 0x60a   :  { %665 = vadd.xlane.f32.xlu1 %v664_v55  ;;  %v661_v56 = vsel %vm57_vm0, %v4113_v54, 0.0 }
 0x60b   :  { %662 = vadd.xlane.f32.xlu0 %v661_v56 }
 0x60c   :  { %v3397_v47 = vpop.f32.mrb[8].mxu1 }
 0x60d   :  { %v892_v48 = vadd.f32 %v3397_v47, %v3057_v46  ;;  %v886_v49 = vpop.f32.mrb[9].mxu1 }
 0x60e   :  { %v887_v50 = vadd.f32 %v3057_v46, %v886_v49  ;;  %v3069_v46 = vld [vmem:[%s4467_s7 + $0x7] ss:$0 sm:$0xff] }
 0x610   :  { %v3676_v51 = vpack.c.bf16 %v892_v48, %v887_v50 }
 0x612   :  { %3678 = vmatprep.subr.msk.bf16.mxu1 %vm4077_vm5, %v3676_v51 }
 0x613   :  { %3681 = vmatpush3.bf16.xpose.msk.msra.mxu1 %vm4077_vm5, %v3676_v51 }
 0x697   :  { %v666_v57 = vpop.xlane.xlu1 %665 }
 0x698   :  { %v668_v58 = vmul.f32 0.03125, %v666_v57  ;;  %v663_v59 = vpop.xlane.xlu0 %662 }
 0x699   :  { %v667_v60 = vmul.f32 0.03125, %v663_v59  ;;  %v896_v59 = vld [vmem:[#allocation2 + $0xc0] sm:$0xff] }
 0x69a   :  { %v670_v61 = vsub.f32 %v4110_v53, %v668_v58 }
 0x69b   :  { %v669_v1 = vsub.f32 %v4113_v54, %v667_v60  ;;  %v897_v60 = vld [vmem:[#allocation2 + $0xc8] sm:$0xff] }
 0x69c   :  { %v672_v62 = vmul.f32 %v670_v61, %v670_v61  ;;  %v704_v37 = vmul.f32 %v3052_v36, %v670_v61  ;;  %v898_v61 = vld [vmem:[#allocation2 + $0xd0] sm:$0xff] }
 0x69d   :  { %v671_v63 = vmul.f32 %v669_v1, %v669_v1  ;;  %v703_v39 = vmul.f32 %v3052_v36, %v669_v1  ;;  %v3668_v1 = vpack.c.bf16 %v897_v60, %v896_v59 }
 0x69e   :  { %v676_v0 = vsel %vm57_vm0, %v672_v62, 0.0  ;;  %v899_v62 = vld [vmem:[#allocation2 + $0xd8] sm:$0xff] }
 0x69f   :  { %677 = vadd.xlane.f32.xlu1 %v676_v0  ;;  %v673_v2 = vsel %vm57_vm0, %v671_v63, 0.0  ;;  %v3672_v63 = vpack.c.bf16 %v899_v62, %v898_v61  ;;  %3669 = vmatprep.subr.bf16.mxu0 %v3668_v1 }
 0x6a0   :  { %674 = vadd.xlane.f32.xlu0 %v673_v2  ;;  %v4164_v2 = vld [vmem:[%s4463_s3 + $0x8] sm:$0xff] }
 0x72c   :  { %v678_v20 = vpop.xlane.xlu1 %677 }
 0x72d   :  { %v680_v21 = vmul.f32 0.032258064, %v678_v20  ;;  %v675_v22 = vpop.xlane.xlu0 %674 }
 0x72e   :  { %v679_v23 = vmul.f32 0.032258064, %v675_v22 }
 0x72f   :  { %3846 = vrsqrt.f32 %v680_v21  ;;  %vm690_vm7 = vcmp.eq.f32.partialorder %v680_v21, inf  ;;  %v693_v27 = vand.u32 2147483648, %v680_v21  ;;  %vm692_vm8 = vcmp.eq.f32.partialorder %v680_v21, 0.0 }
 0x730   :  { %3848 = vrsqrt.f32 %v679_v23  ;;  %vm683_vm9 = vcmp.eq.f32.partialorder %v679_v23, inf  ;;  %v686_v30 = vand.u32 2147483648, %v679_v23  ;;  %vm685_vm10 = vcmp.eq.f32.partialorder %v679_v23, 0.0 }
 0x739   :  { %v3847_v24 = vpop.eup %3846 }
 0x73a   :  { %v3849_v25 = vpop.eup %3848  ;;  %v689_v26 = vmul.f32 %v3847_v24, %v680_v21 }
 0x73b   :  { %v682_v28 = vmul.f32 %v3849_v25, %v679_v23 }
 0x73c   :  { %v691_v29 = vsel %vm690_vm7, %v680_v21, %v689_v26 }
 0x73d   :  { %v694_v31 = vsel %vm692_vm8, %v693_v27, %v691_v29  ;;  %v684_v32 = vsel %vm683_vm9, %v679_v23, %v682_v28  ;;  %v3060_v27 = vld [vmem:[%s4467_s7 + $0x6] ss:$0 sm:$0xff] }
 0x73e   :  { %v696_v33 = vadd.f32 1e-06, %v694_v31  ;;  %v687_v34 = vsel %vm685_vm10, %v686_v30, %v684_v32  ;;  %v1175_v32 = vld [vmem:[#allocation2 + $0xe0] sm:$0xff] }
 0x73f   :  { %v695_v35 = vadd.f32 1e-06, %v687_v34 }
 0x740   :  { %3850 = vrcp.f32 %v696_v33  ;;  %v1176_v33 = vld [vmem:[#allocation2 + $0xe8] sm:$0xff] }
 0x741   :  { %3852 = vrcp.f32 %v695_v35  ;;  %v3686_v34 = vpack.c.bf16 %v1176_v33, %v1175_v32 }
 0x74a   :  { %v3851_v38 = vpop.eup %3850 }
 0x74b   :  { %v3853_v40 = vpop.eup %3852  ;;  %v706_v42 = vmul.f32 %v3851_v38, %v704_v37  ;;  %v1177_v38 = vld [vmem:[#allocation2 + $0xf0] sm:$0xff] }
 0x74c   :  { %v705_v43 = vmul.f32 %v3853_v40, %v703_v39  ;;  %v1178_v39 = vld [vmem:[#allocation2 + $0xf8] sm:$0xff] }
 0x74d   :  { %v712_v45 = vadd.f32 %v3053_v41, %v706_v42 }
 0x74e   :  { %v711_v44 = vadd.f32 %v3053_v41, %v705_v43  ;;  %v3690_v43 = vpack.c.bf16 %v1178_v39, %v1177_v38  ;;  %v3072_v39 = vld [vmem:[%s4467_s7 + $0xe] ss:$0 sm:$0xff] }
 0x750   :  { %3384 = vmatprep.mubr.msk.f32.mxu0 %vm57_vm0, %v711_v44 }
 0x751   :  { %3385 = vmatmul.mubr.msk.f32.vlgmr.msra.gmra.mrb[4].mxu0 %vm57_vm0, %v712_v45 }
 0x752   :  { %3406 = vmatprep.mubr.msk.f32.mxu0 %vm57_vm0, %v4126_v9  ;;  %3671 = vmatpush3.bf16.msra.mxu0 %v3668_v1 }
 0x753   :  { %3673 = vmatprep.subr.bf16.mxu0 %v3672_v63 }
 0x756   :  { %3675 = vmatpush3.bf16.msra.mxu0 %v3672_v63 }
 0x759   :  { %3407 = vmatmul.mubr.msk.f32.vlgmr.msra.gmra.mrb[6].mxu0 %vm57_vm0, %v4133_v19 }
 0x824   :  { %v3386_v55 = vpop.f32.mrb[4].mxu0 }
 0x825   :  { %v795_v56 = vpop.f32.mrb[5].mxu0  ;;  %v801_v58 = vadd.f32 %v3386_v55, %v3054_v52 }
 0x826   :  { %v796_v57 = vadd.f32 %v3054_v52, %v795_v56 }
 0x828   :  { %3413 = vmatprep.mubr.msk.f32.mxu1 %vm57_vm0, %v796_v57 }
 0x829   :  { %3414 = vmatmul.mubr.msk.f32.vlgmr.msra.gmra.mrb[10].mxu1 %vm57_vm0, %v801_v58 }
 0x82c   :  { %v3408_v26 = vpop.f32.mrb[6].mxu0 }
 0x82d   :  { %v971_v28 = vpop.f32.mrb[7].mxu0  ;;  %v977_v29 = vadd.f32 %v3408_v26, %v3060_v27 }
 0x82e   :  { %v972_v30 = vadd.f32 %v3060_v27, %v971_v28 }
 0x830   :  { %v3682_v31 = vpack.c.bf16 %v977_v29, %v972_v30 }
 0x832   :  { %3683 = vmatprep.subr.bf16.mxu0 %v3682_v31 }
 0x833   :  { %3685 = vmatpush3.bf16.msra.mxu0 %v3682_v31 }
 0x834   :  { %3687 = vmatprep.subr.bf16.mxu0 %v3686_v34 }
 0x8fc   :  { %v3415_v0 = vpop.f32.mrb[10].mxu1 }
 0x8fd   :  { %v1068_v3 = vmul.f32 0.17677669, %v3415_v0  ;;  %v1058_v4 = vpop.f32.mrb[11].mxu1  ;;  %v1321_v0 = vld [vmem:[%s4465_s5] sm:$0xff] }
 0x8fe   :  { %v1067_v6 = vmul.f32 0.17677669, %v1058_v4  ;;  %v1323_v4 = vld [vmem:[%s4465_s5 + $0x10] sm:$0xff] }
 0x8ff   :  { %v1070_v7 = vadd.f32 %v1068_v3, %v4164_v2  ;;  %v1322_v3 = vld [vmem:[%s4465_s5 + $0x8] sm:$0xff] }
 0x900   :  { %v1069_v8 = vadd.f32 %v1067_v6, %v4169_v5  ;;  %v3694_v6 = vpack.c.bf16 %v1322_v3, %v1321_v0 }
 0x901   :  { %v1074_v10 = vsel %vm462_vm6, %v1070_v7, -inf }
 0x902   :  { %1075 = vmax.xlane.f32.xlu1 %v1074_v10  ;;  %v1071_v12 = vsel %vm462_vm6, %v1069_v8, -inf  ;;  %3695 = vmatprep.subr.bf16.mxu1 %v3694_v6  ;;  %v1413_v10 = vld [vmem:[%s4466_s6] sm:$0xff] }
 0x903   :  { %1072 = vmax.xlane.f32.xlu0 %v1071_v12  ;;  %3697 = vmatpush3.bf16.msra.mxu1 %v3694_v6  ;;  %v1414_v12 = vld [vmem:[%s4466_s6 + $0x8] sm:$0xff] }
 0x98f   :  { %v1076_v13 = vpop.xlane.xlu1 %1075 }
 0x990   :  { %v1078_v14 = vsub.f32 %v1070_v7, %v1076_v13  ;;  %v1073_v16 = vpop.xlane.xlu0 %1072  ;;  %v1324_v7 = vld [vmem:[%s4465_s5 + $0x18] sm:$0xff]  ;;  %v1415_v13 = vld [vmem:[%s4466_s6 + $0x10] sm:$0xff] }
 0x991   :  { %v1077_v17 = vsub.f32 %v1069_v8, %v1073_v16  ;;  %v3698_v8 = vpack.c.bf16 %v1324_v7, %v1323_v4  ;;  %v1416_v16 = vld [vmem:[%s4466_s6 + $0x18] sm:$0xff] }
 0x992   :  { %v1081_v20 = vmul.f32 1.442695, %v1078_v14  ;;  %v3702_v14 = vpack.c.bf16 %v1414_v12, %v1413_v10 }
 0x993   :  { %v1079_v21 = vmul.f32 1.442695, %v1077_v17  ;;  %3699 = vmatprep.subr.bf16.mxu1 %v3698_v8  ;;  %v3706_v17 = vpack.c.bf16 %v1416_v16, %v1415_v13 }
 0x994   :  { %3854 = vpow2.f32 %v1081_v20  ;;  %3701 = vmatpush3.bf16.msra.mxu1 %v3698_v8  ;;  %v1417_v20 = vld [vmem:[%s4466_s6 + $0x20] sm:$0xff] }
 0x995   :  { %3856 = vpow2.f32 %v1079_v21  ;;  %v1418_v21 = vld [vmem:[%s4466_s6 + $0x28] sm:$0xff] }
 0x99e   :  { %v3855_v22 = vpop.eup %3854 }
 0x99f   :  { %v3857_v23 = vpop.eup %3856  ;;  %v1086_v24 = vsel %vm462_vm6, %v3855_v22, 0.0 }
 0x9a0   :  { %1087 = vadd.xlane.f32.xlu1 %v1086_v24  ;;  %v1083_v25 = vsel %vm462_vm6, %v3857_v23, 0.0 }
 0x9a1   :  { %1084 = vadd.xlane.f32.xlu0 %v1083_v25 }
 0xa2d   :  { %v1088_v35 = vpop.xlane.xlu1 %1087 }
 0xa2e   :  { %3858 = vrcp.f32 %v1088_v35  ;;  %v1085_v36 = vpop.xlane.xlu0 %1084 }
 0xa2f   :  { %3860 = vrcp.f32 %v1085_v36 }
 0xa38   :  { %v3859_v37 = vpop.eup %3858 }
 0xa39   :  { %v3861_v40 = vpop.eup %3860  ;;  %v1092_v42 = vmul.f32 %v3859_v37, %v3855_v22  ;;  %v3710_v22 = vpack.c.bf16 %v1418_v21, %v1417_v20  ;;  %v1566_v21 = vld [vmem:[#allocation2 + $0x100] sm:$0xff] }
 0xa3a   :  { %v1091_v41 = vmul.f32 %v3861_v40, %v3857_v23 }
 0xa3c   :  { %3420 = vmatprep.mubr.msk.f32.mxu0 %vm462_vm6, %v1091_v41 }
 0xa3d   :  { %3421 = vmatmul.mubr.msk.f32.vlgmr.msra.gmra.mrb[8].mxu0 %vm462_vm6, %v1092_v42 }
 0xa3e   :  { %3689 = vmatpush3.bf16.msra.mxu0 %v3686_v34 }
 0xa3f   :  { %3691 = vmatprep.subr.bf16.mxu0 %v3690_v43 }
 0xa42   :  { %3693 = vmatpush3.bf16.msra.mxu0 %v3690_v43 }
 0xa43   :  { %3703 = vmatprep.subr.bf16.mxu0 %v3702_v14 }
 0xb10   :  { %v3422_v44 = vpop.f32.mrb[8].mxu0 }
 0xb11   :  { %v1165_v45 = vpop.f32.mrb[9].mxu0 }
 0xb12   :  { %3431 = vmatprep.mubr.msk.f32.mxu0 %vm57_vm0, %v1165_v45 }
 0xb13   :  { %3432 = vmatmul.mubr.msk.f32.vlgmr.msra.gmra.mrb[10].mxu0 %vm57_vm0, %v3422_v44  ;;  %v3073_v44 = vld [vmem:[%s4467_s7 + $0xf] ss:$0 sm:$0xff] }
 0xb14   :  { %3705 = vmatpush3.bf16.msra.mxu0 %v3702_v14 }
 0xb15   :  { %3707 = vmatprep.subr.bf16.mxu0 %v3706_v17 }
 0xb18   :  { %3709 = vmatpush3.bf16.msra.mxu0 %v3706_v17 }
 0xb19   :  { %3711 = vmatprep.subr.bf16.mxu0 %v3710_v22 }
 0xb1c   :  { %3713 = vmatpush3.bf16.msra.mxu0 %v3710_v22  ;;  %v1567_v22 = vld [vmem:[#allocation2 + $0x108] sm:$0xff] }
 0xbe6   :  { %v3433_v47 = vpop.f32.mrb[10].mxu0 }
 0xbe7   :  { %v1262_v48 = vadd.f32 %v3433_v47, %v3069_v46  ;;  %v1256_v49 = vpop.f32.mrb[11].mxu0 }
 0xbe8   :  { %v1257_v50 = vadd.f32 %v3069_v46, %v1256_v49  ;;  %v1419_v49 = vld [vmem:[%s4466_s6 + $0x30] sm:$0xff] }
 0xbe9   :  { %v4188_v51 = vadd.f32 %v1262_v48, %v4110_v53 }
 0xbea   :  { %v4191_v52 = vadd.f32 %v1257_v50, %v4113_v54  ;;  %v1420_v50 = vld [vmem:[%s4466_s6 + $0x38] sm:$0xff] }
 0xbeb   :  { %v1272_v55 = vsel %vm57_vm0, %v4188_v51, 0.0 }
 0xbec   :  { %1273 = vadd.xlane.f32.xlu1 %v1272_v55  ;;  %v1269_v56 = vsel %vm57_vm0, %v4191_v52, 0.0  ;;  %v3714_v55 = vpack.c.bf16 %v1420_v50, %v1419_v49 }
 0xbed   :  { %1270 = vadd.xlane.f32.xlu0 %v1269_v56  ;;  %v3074_v56 = vld [vmem:[%s4467_s7 + $0x9] ss:$0 sm:$0xff] }
 0xbee   :  { %3715 = vmatprep.subr.bf16.mxu0 %v3714_v55 }
 0xbef   :  { %3717 = vmatpush3.bf16.msra.mxu0 %v3714_v55 }
 0xc79   :  { %v1274_v57 = vpop.xlane.xlu1 %1273 }
 0xc7a   :  { %v1276_v58 = vmul.f32 0.03125, %v1274_v57  ;;  %v1271_v59 = vpop.xlane.xlu0 %1270 }
 0xc7b   :  { %v1275_v60 = vmul.f32 0.03125, %v1271_v59 }
 0xc7c   :  { %v1278_v61 = vsub.f32 %v4188_v51, %v1276_v58 }
 0xc7d   :  { %v1277_v53 = vsub.f32 %v4191_v52, %v1275_v60 }
 0xc7e   :  { %v1280_v1 = vmul.f32 %v1278_v61, %v1278_v61  ;;  %v1312_v40 = vmul.f32 %v3072_v39, %v1278_v61 }
 0xc7f   :  { %v1279_v62 = vmul.f32 %v1277_v53, %v1277_v53  ;;  %v1311_v42 = vmul.f32 %v3072_v39, %v1277_v53 }
 0xc80   :  { %v1284_v54 = vsel %vm57_vm0, %v1280_v1, 0.0  ;;  %v3077_v1 = vld [vmem:[%s4467_s7 + $0x8] ss:$0 sm:$0xff] }
 0xc81   :  { %1285 = vadd.xlane.f32.xlu1 %v1284_v54  ;;  %v1281_v63 = vsel %vm57_vm0, %v1279_v62, 0.0 }
 0xc82   :  { %1282 = vadd.xlane.f32.xlu0 %v1281_v63 }
 0xd0e   :  { %v1286_v23 = vpop.xlane.xlu1 %1285 }
 0xd0f   :  { %v1288_v24 = vmul.f32 0.032258064, %v1286_v23  ;;  %v1283_v25 = vpop.xlane.xlu0 %1282  ;;  %v1742_v23 = vld [vmem:[#allocation2 + $0x140] sm:$0xff] }
 0xd10   :  { %v1287_v26 = vmul.f32 0.032258064, %v1283_v25  ;;  %v1743_v25 = vld [vmem:[#allocation2 + $0x148] sm:$0xff] }
 0xd11   :  { %3862 = vrsqrt.f32 %v1288_v24  ;;  %vm1298_vm11 = vcmp.eq.f32.partialorder %v1288_v24, inf  ;;  %v1301_v30 = vand.u32 2147483648, %v1288_v24  ;;  %vm1300_vm12 = vcmp.eq.f32.partialorder %v1288_v24, 0.0 }
 0xd12   :  { %3864 = vrsqrt.f32 %v1287_v26  ;;  %vm1291_vm13 = vcmp.eq.f32.partialorder %v1287_v26, inf  ;;  %v1294_v33 = vand.u32 2147483648, %v1287_v26  ;;  %vm1293_vm14 = vcmp.eq.f32.partialorder %v1287_v26, 0.0 }
 0xd1b   :  { %v3863_v27 = vpop.eup %3862 }
 0xd1c   :  { %v3865_v28 = vpop.eup %3864  ;;  %v1297_v29 = vmul.f32 %v3863_v27, %v1288_v24  ;;  %v1569_v27 = vld [vmem:[#allocation2 + $0x118] sm:$0xff] }
 0xd1d   :  { %v1290_v31 = vmul.f32 %v3865_v28, %v1287_v26  ;;  %v3734_v28 = vpack.c.bf16 %v1743_v25, %v1742_v23 }
 0xd1e   :  { %v1299_v32 = vsel %vm1298_vm11, %v1288_v24, %v1297_v29  ;;  %v3718_v24 = vpack.c.bf16 %v1567_v22, %v1566_v21 }
 0xd1f   :  { %v1302_v34 = vsel %vm1300_vm12, %v1301_v30, %v1299_v32  ;;  %v1292_v35 = vsel %vm1291_vm13, %v1287_v26, %v1290_v31  ;;  %v1568_v26 = vld [vmem:[#allocation2 + $0x110] sm:$0xff]  ;;  %v1745_v31 = vld [vmem:[#allocation2 + $0x158] sm:$0xff]  ;;  %3735 = vmatprep.subr.bf16.mxu0 %v3734_v28 }
 0xd20   :  { %v1304_v36 = vadd.f32 1e-06, %v1302_v34  ;;  %v1295_v37 = vsel %vm1293_vm14, %v1294_v33, %v1292_v35  ;;  %v3722_v29 = vpack.c.bf16 %v1569_v27, %v1568_v26  ;;  %v1744_v30 = vld [vmem:[#allocation2 + $0x150] sm:$0xff]  ;;  %3719 = vmatprep.subr.bf16.mxu1 %v3718_v24  ;;  %v1657_v33 = vld [vmem:[#allocation2 + $0x120] sm:$0xff]  ;;  %v1658_v34 = vld [vmem:[#allocation2 + $0x128] sm:$0xff] }
 0xd21   :  { %v1303_v38 = vadd.f32 1e-06, %v1295_v37  ;;  %v3738_v32 = vpack.c.bf16 %v1745_v31, %v1744_v30  ;;  %v3726_v35 = vpack.c.bf16 %v1658_v34, %v1657_v33 }
 0xd22   :  { %3866 = vrcp.f32 %v1304_v36 }
 0xd23   :  { %3868 = vrcp.f32 %v1303_v38 }
 0xd2c   :  { %v3867_v41 = vpop.eup %3866 }
 0xd2d   :  { %v3869_v43 = vpop.eup %3868  ;;  %v1314_v45 = vmul.f32 %v3867_v41, %v1312_v40 }
 0xd2e   :  { %v1313_v46 = vmul.f32 %v3869_v43, %v1311_v42 }
 0xd2f   :  { %v1320_v48 = vadd.f32 %v3073_v44, %v1314_v45 }
 0xd30   :  { %v1319_v47 = vadd.f32 %v3073_v44, %v1313_v46 }
 0xd32   :  { %3442 = vmatprep.mubr.msk.f32.mxu1 %vm57_vm0, %v1319_v47 }
 0xd33   :  { %3443 = vmatmul.mubr.msk.f32.vlgmr.msra.gmra.mrb[12].mxu1 %vm57_vm0, %v1320_v48 }
 0xd34   :  { %3721 = vmatpush3.bf16.msra.mxu1 %v3718_v24 }
 0xd35   :  { %3723 = vmatprep.subr.bf16.mxu1 %v3722_v29 }
 0xd38   :  { %3725 = vmatpush3.bf16.msra.mxu1 %v3722_v29 }
 0xd39   :  { %3727 = vmatprep.subr.bf16.mxu1 %v3726_v35 }
 0xe06   :  { %v3444_v57 = vpop.f32.mrb[12].mxu1 }
 0xe07   :  { %v1408_v58 = vadd.f32 %v3444_v57, %v3074_v56  ;;  %v1402_v59 = vpop.f32.mrb[13].mxu1 }
 0xe08   :  { %v1403_v60 = vadd.f32 %v3074_v56, %v1402_v59  ;;  %v3082_v56 = vld [vmem:[%s4467_s7 + $0x1a] ss:$0 sm:$0xff] }
 0xe09   :  { %v1412_v53 = vmax.f32 %v1408_v58, 0.0 }
 0xe0a   :  { %v1411_v61 = vmax.f32 %v1403_v60, 0.0 }
 0xe0c   :  { %3461 = vmatprep.mubr.msk.f32.mxu0 %vm1426_vm15, %v1411_v61  ;;  %v3083_v61 = vld [vmem:[%s4467_s7 + $0x1b] ss:$0 sm:$0xff] }
 0xe0d   :  { %3462 = vmatmul.mubr.msk.f32.vlgmr.msra.gmra.mrb[12].mxu0 %vm1426_vm15, %v1412_v53 }
 0xe0e   :  { %3737 = vmatpush3.bf16.msra.mxu0 %v3734_v28 }
 0xe0f   :  { %3739 = vmatprep.subr.bf16.mxu0 %v3738_v32 }
 0xe12   :  { %3741 = vmatpush3.bf16.msra.mxu0 %v3738_v32 }
 0xee0   :  { %v3463_v62 = vpop.f32.mrb[12].mxu0 }
 0xee1   :  { %v1505_v54 = vadd.f32 %v3463_v62, %v3077_v1  ;;  %v1499_v63 = vpop.f32.mrb[13].mxu0  ;;  %v1659_v62 = vld [vmem:[#allocation2 + $0x130] sm:$0xff] }
 0xee2   :  { %v1500_v0 = vadd.f32 %v3077_v1, %v1499_v63 }
 0xee3   :  { %v4254_v3 = vadd.f32 %v1505_v54, %v4188_v51  ;;  %v1660_v54 = vld [vmem:[#allocation2 + $0x138] sm:$0xff] }
 0xee4   :  { %v4257_v4 = vadd.f32 %v1500_v0, %v4191_v52 }
 0xee5   :  { %v1516_v6 = vsel %vm57_vm0, %v4254_v3, 0.0 }
 0xee6   :  { %1517 = vadd.xlane.f32.xlu1 %v1516_v6  ;;  %v1513_v7 = vsel %vm57_vm0, %v4257_v4, 0.0  ;;  %v3730_v6 = vpack.c.bf16 %v1660_v54, %v1659_v62 }
 0xee7   :  { %1514 = vadd.xlane.f32.xlu0 %v1513_v7  ;;  %v3093_v7 = vld [vmem:[%s4467_s7 + $0x12] ss:$0 sm:$0xff] }
 0xf73   :  { %v1518_v8 = vpop.xlane.xlu1 %1517 }
 0xf74   :  { %v1520_v10 = vmul.f32 0.03125, %v1518_v8  ;;  %v1515_v12 = vpop.xlane.xlu0 %1514  ;;  %v3085_v8 = vld [vmem:[%s4467_s7 + $0x10] ss:$0 sm:$0xff] }
 0xf75   :  { %v1519_v13 = vmul.f32 0.03125, %v1515_v12 }
 0xf76   :  { %v1522_v14 = vsub.f32 %v4254_v3, %v1520_v10 }
 0xf77   :  { %v1521_v51 = vsub.f32 %v4257_v4, %v1519_v13 }
 0xf78   :  { %v1524_v16 = vmul.f32 %v1522_v14, %v1522_v14  ;;  %v1556_v57 = vmul.f32 %v3082_v56, %v1522_v14 }
 0xf79   :  { %v1523_v17 = vmul.f32 %v1521_v51, %v1521_v51  ;;  %v1555_v59 = vmul.f32 %v3082_v56, %v1521_v51 }
 0xf7a   :  { %v1528_v52 = vsel %vm57_vm0, %v1524_v16, 0.0 }
 0xf7b   :  { %1529 = vadd.xlane.f32.xlu1 %v1528_v52  ;;  %v1525_v20 = vsel %vm57_vm0, %v1523_v17, 0.0 }
 0xf7c   :  { %1526 = vadd.xlane.f32.xlu0 %v1525_v20  ;;  %v3089_v20 = vld [vmem:[%s4467_s7 + $0x11] ss:$0 sm:$0xff] }
0x1008   :  { %v1530_v36 = vpop.xlane.xlu1 %1529 }
0x1009   :  { %v1532_v37 = vmul.f32 0.032258064, %v1530_v36  ;;  %v1527_v38 = vpop.xlane.xlu0 %1526 }
0x100a   :  { %v1531_v39 = vmul.f32 0.032258064, %v1527_v38 }
0x100b   :  { %3870 = vrsqrt.f32 %v1532_v37  ;;  %vm1542_vm1 = vcmp.eq.f32.partialorder %v1532_v37, inf  ;;  %v1545_v43 = vand.u32 2147483648, %v1532_v37  ;;  %vm1544_vm2 = vcmp.eq.f32.partialorder %v1532_v37, 0.0 }
0x100c   :  { %3872 = vrsqrt.f32 %v1531_v39  ;;  %vm1535_vm3 = vcmp.eq.f32.partialorder %v1531_v39, inf  ;;  %v1538_v46 = vand.u32 2147483648, %v1531_v39  ;;  %vm1537_vm4 = vcmp.eq.f32.partialorder %v1531_v39, 0.0 }
0x1015   :  { %v3871_v40 = vpop.eup %3870 }
0x1016   :  { %v3873_v41 = vpop.eup %3872  ;;  %v1541_v42 = vmul.f32 %v3871_v40, %v1532_v37 }
0x1017   :  { %v1534_v44 = vmul.f32 %v3873_v41, %v1531_v39 }
0x1018   :  { %v1543_v45 = vsel %vm1542_vm1, %v1532_v37, %v1541_v42 }
0x1019   :  { %v1546_v47 = vsel %vm1544_vm2, %v1545_v43, %v1543_v45  ;;  %v1536_v48 = vsel %vm1535_vm3, %v1531_v39, %v1534_v44  ;;  %v2021_v43 = vld [vmem:[#allocation2 + $0x160] sm:$0xff]  ;;  %v2022_v44 = vld [vmem:[#allocation2 + $0x168] sm:$0xff]  ;;  %v2023_v45 = vld [vmem:[#allocation2 + $0x170] sm:$0xff] }
0x101a   :  { %v1548_v49 = vadd.f32 1e-06, %v1546_v47  ;;  %v1539_v50 = vsel %vm1537_vm4, %v1538_v46, %v1536_v48  ;;  %v3752_v46 = vpack.c.bf16 %v2022_v44, %v2021_v43  ;;  %v2024_v47 = vld [vmem:[#allocation2 + $0x178] sm:$0xff] }
0x101b   :  { %v1547_v55 = vadd.f32 1e-06, %v1539_v50  ;;  %v3756_v48 = vpack.c.bf16 %v2024_v47, %v2023_v45  ;;  %v3108_v45 = vld [vmem:[%s4467_s7 + $0x1c] ss:$0 sm:$0xff] }
0x101c   :  { %3874 = vrcp.f32 %v1548_v49 }
0x101d   :  { %3876 = vrcp.f32 %v1547_v55 }
0x1026   :  { %v3875_v58 = vpop.eup %3874 }
0x1027   :  { %v3877_v60 = vpop.eup %3876  ;;  %v1558_v53 = vmul.f32 %v3875_v58, %v1556_v57 }
0x1028   :  { %v1557_v1 = vmul.f32 %v3877_v60, %v1555_v59 }
0x1029   :  { %v1564_v0 = vadd.f32 %v3083_v61, %v1558_v53 }
0x102a   :  { %v1563_v63 = vadd.f32 %v3083_v61, %v1557_v1  ;;  %v3103_v61 = vld [vmem:[%s4467_s7 + $0x13] ss:$0 sm:$0xff] }
0x102c   :  { %3472 = vmatprep.mubr.msk.f32.mxu1 %vm57_vm0, %v1563_v63  ;;  %3494 = vmatprep.mubr.msk.f32.mxu0 %vm57_vm0, %v1563_v63 }
0x102d   :  { %3473 = vmatmul.mubr.msk.f32.vlgmr.msra.gmra.mrb[14].mxu1 %vm57_vm0, %v1564_v0  ;;  %3495 = vmatmul.mubr.msk.f32.vlgmr.msra.gmra.mrb[14].mxu0 %vm57_vm0, %v1564_v0 }
0x102e   :  { %3729 = vmatpush3.bf16.msra.mxu1 %v3726_v35  ;;  %3483 = vmatprep.mubr.msk.f32.mxu1 %vm57_vm0, %v1563_v63 }
0x102f   :  { %3731 = vmatprep.subr.bf16.mxu1 %v3730_v6 }
0x1032   :  { %3733 = vmatpush3.bf16.msra.mxu1 %v3730_v6 }
0x1035   :  { %3484 = vmatmul.mubr.msk.f32.vlgmr.msra.gmra.mrb[16].mxu1 %vm57_vm0, %v1564_v0 }
0x1100   :  { %v3474_v10 = vpop.f32.mrb[14].mxu1  ;;  %v3496_v12 = vpop.f32.mrb[14].mxu0 }
0x1101   :  { %v1823_v13 = vadd.f32 %v3496_v12, %v3093_v7  ;;  %v1647_v14 = vpop.f32.mrb[15].mxu1  ;;  %v1817_v51 = vpop.f32.mrb[15].mxu0  ;;  %v1653_v26 = vadd.f32 %v3474_v10, %v3085_v8 }
0x1102   :  { %v1648_v16 = vadd.f32 %v3085_v8, %v1647_v14  ;;  %v1818_v17 = vadd.f32 %v3093_v7, %v1817_v51 }
0x1104   :  { %v3748_v52 = vpack.c.bf16 %v1823_v13, %v1818_v17  ;;  %3501 = vmatprep.mubr.msk.f32.mxu1 %vm57_vm0, %v1648_v16 }
0x1106   :  { %3749 = vmatprep.subr.bf16.mxu0 %v3748_v52 }
0x1107   :  { %3751 = vmatpush3.bf16.msra.mxu0 %v3748_v52  ;;  %v2259_v52 = vld [vmem:[#allocation2 + $0x1a0] sm:$0xff] }
0x1108   :  { %v3485_v21 = vpop.f32.mrb[16].mxu1 }
0x1109   :  { %v1738_v22 = vadd.f32 %v3485_v21, %v3089_v20  ;;  %v1732_v23 = vpop.f32.mrb[17].mxu1 }
0x110a   :  { %v1733_v24 = vadd.f32 %v3089_v20, %v1732_v23  ;;  %v2260_v20 = vld [vmem:[#allocation2 + $0x1a8] sm:$0xff]  ;;  %v2262_v23 = vld [vmem:[#allocation2 + $0x1b8] sm:$0xff] }
0x110b   :  { %v3768_v21 = vpack.c.bf16 %v2260_v20, %v2259_v52 }
0x110c   :  { %v3742_v25 = vpack.c.bf16 %v1738_v22, %v1733_v24  ;;  %v2261_v22 = vld [vmem:[#allocation2 + $0x1b0] sm:$0xff] }
0x110d   :  { %v3772_v24 = vpack.c.bf16 %v2262_v23, %v2261_v22 }
0x110e   :  { %3744 = vmatprep.subr.msk.bf16.mxu1 %vm4077_vm5, %v3742_v25 }
0x110f   :  { %3747 = vmatpush3.bf16.xpose.msk.msra.mxu1 %vm4077_vm5, %v3742_v25  ;;  %v2168_v25 = vld [vmem:[#allocation2 + $0x180] sm:$0xff] }
0x1110   :  { %3753 = vmatprep.subr.bf16.mxu1 %v3752_v46 }
0x1116   :  { %3502 = vmatmul.mubr.msk.f32.vlgmr.msra.gmra.mrb[18].mxu1 %vm57_vm0, %v1653_v26  ;;  %v2169_v26 = vld [vmem:[#allocation2 + $0x188] sm:$0xff] }
0x1117   :  { %3755 = vmatpush3.bf16.msra.mxu1 %v3752_v46 }
0x1118   :  { %3757 = vmatprep.subr.bf16.mxu1 %v3756_v48 }
0x111b   :  { %3759 = vmatpush3.bf16.msra.mxu1 %v3756_v48 }
0x111c   :  { %3769 = vmatprep.subr.bf16.mxu1 %v3768_v21 }
0x11e9   :  { %v3503_v27 = vpop.f32.mrb[18].mxu1 }
0x11ea   :  { %v1914_v28 = vmul.f32 0.17677669, %v3503_v27  ;;  %v1904_v29 = vpop.f32.mrb[19].mxu1  ;;  %v2170_v27 = vld [vmem:[#allocation2 + $0x190] sm:$0xff] }
0x11eb   :  { %v1913_v30 = vmul.f32 0.17677669, %v1904_v29  ;;  %v2171_v29 = vld [vmem:[#allocation2 + $0x198] sm:$0xff] }
0x11ec   :  { %v1916_v31 = vadd.f32 %v1914_v28, %v4089_v15  ;;  %v3760_v28 = vpack.c.bf16 %v2169_v26, %v2168_v25 }
0x11ed   :  { %v1915_v32 = vadd.f32 %v1913_v30, %v4094_v18  ;;  %v3764_v30 = vpack.c.bf16 %v2171_v29, %v2170_v27 }
0x11ee   :  { %v1920_v33 = vsel %vm462_vm6, %v1916_v31, -inf  ;;  %3761 = vmatprep.subr.bf16.mxu0 %v3760_v28 }
0x11ef   :  { %1921 = vmax.xlane.f32.xlu1 %v1920_v33  ;;  %v1917_v34 = vsel %vm462_vm6, %v1915_v32, -inf }
0x11f0   :  { %1918 = vmax.xlane.f32.xlu0 %v1917_v34 }
0x127c   :  { %v1922_v35 = vpop.xlane.xlu1 %1921 }
0x127d   :  { %v1924_v36 = vsub.f32 %v1916_v31, %v1922_v35  ;;  %v1919_v37 = vpop.xlane.xlu0 %1918 }
0x127e   :  { %v1923_v38 = vsub.f32 %v1915_v32, %v1919_v37 }
0x127f   :  { %v1927_v39 = vmul.f32 1.442695, %v1924_v36 }
0x1280   :  { %v1925_v40 = vmul.f32 1.442695, %v1923_v38 }
0x1281   :  { %3878 = vpow2.f32 %v1927_v39 }
0x1282   :  { %3880 = vpow2.f32 %v1925_v40 }
0x128b   :  { %v3879_v41 = vpop.eup %3878 }
0x128c   :  { %v3881_v42 = vpop.eup %3880  ;;  %v1932_v15 = vsel %vm462_vm6, %v3879_v41, 0.0 }
0x128d   :  { %1933 = vadd.xlane.f32.xlu1 %v1932_v15  ;;  %v1929_v18 = vsel %vm462_vm6, %v3881_v42, 0.0 }
0x128e   :  { %1930 = vadd.xlane.f32.xlu0 %v1929_v18 }
0x131a   :  { %v1934_v49 = vpop.xlane.xlu1 %1933 }
0x131b   :  { %3882 = vrcp.f32 %v1934_v49  ;;  %v1931_v50 = vpop.xlane.xlu0 %1930 }
0x131c   :  { %3884 = vrcp.f32 %v1931_v50  ;;  %v3109_v50 = vld [vmem:[%s4467_s7 + $0x1d] ss:$0 sm:$0xff] }
0x1325   :  { %v3883_v55 = vpop.eup %3882 }
0x1326   :  { %v3885_v56 = vpop.eup %3884  ;;  %v1938_v58 = vmul.f32 %v3883_v55, %v3879_v41 }
0x1327   :  { %v1937_v57 = vmul.f32 %v3885_v56, %v3881_v42 }
0x1329   :  { %3508 = vmatprep.mubr.msk.f32.mxu0 %vm462_vm6, %v1937_v57 }
0x132a   :  { %3509 = vmatmul.mubr.msk.f32.vlgmr.msra.gmra.mrb[16].mxu0 %vm462_vm6, %v1938_v58 }
0x132b   :  { %3763 = vmatpush3.bf16.msra.mxu0 %v3760_v28 }
0x132c   :  { %3765 = vmatprep.subr.bf16.mxu0 %v3764_v30 }
0x132f   :  { %3767 = vmatpush3.bf16.msra.mxu0 %v3764_v30 }
0x13fd   :  { %v3510_v59 = vpop.f32.mrb[16].mxu0 }
0x13fe   :  { %v2011_v60 = vpop.f32.mrb[17].mxu0 }
0x13ff   :  { %3519 = vmatprep.mubr.msk.f32.mxu1 %vm57_vm0, %v2011_v60 }
0x1400   :  { %3520 = vmatmul.mubr.msk.f32.vlgmr.msra.gmra.mrb[20].mxu1 %vm57_vm0, %v3510_v59  ;;  %v3115_v59 = vld [vmem:[%s4467_s7 + $0x15] ss:$0 sm:$0xff] }
0x1401   :  { %3541 = vmatprep.mubr.msk.f32.mxu1 %vm57_vm0, %v4126_v9  ;;  %3771 = vmatpush3.bf16.msra.mxu1 %v3768_v21 }
0x1402   :  { %3773 = vmatprep.subr.bf16.mxu1 %v3772_v24 }
0x1405   :  { %3775 = vmatpush3.bf16.msra.mxu1 %v3772_v24 }
0x1408   :  { %3542 = vmatmul.mubr.msk.f32.vlgmr.msra.gmra.mrb[22].mxu1 %vm57_vm0, %v4133_v19 }
0x14d3   :  { %v3521_v53 = vpop.f32.mrb[20].mxu1 }
0x14d4   :  { %v2108_v1 = vadd.f32 %v3521_v53, %v3103_v61  ;;  %v2102_v62 = vpop.f32.mrb[21].mxu1 }
0x14d5   :  { %v2103_v54 = vadd.f32 %v3103_v61, %v2102_v62 }
0x14d6   :  { %v4310_v63 = vadd.f32 %v2108_v1, %v4254_v3 }
0x14d7   :  { %v4313_v0 = vadd.f32 %v2103_v54, %v4257_v4  ;;  %v3111_v54 = vld [vmem:[%s4467_s7 + $0x14] ss:$0 sm:$0xff] }
0x14d8   :  { %v2118_v6 = vsel %vm57_vm0, %v4310_v63, 0.0 }
0x14d9   :  { %2119 = vadd.xlane.f32.xlu1 %v2118_v6  ;;  %v2115_v7 = vsel %vm57_vm0, %v4313_v0, 0.0 }
0x14da   :  { %2116 = vadd.xlane.f32.xlu0 %v2115_v7 }
0x14db   :  { %v3543_v60 = vpop.f32.mrb[22].mxu1 }
0x14dc   :  { %v2340_v61 = vadd.f32 %v3543_v60, %v3115_v59  ;;  %v2334_v53 = vpop.f32.mrb[23].mxu1 }
0x14dd   :  { %v2335_v1 = vadd.f32 %v3115_v59, %v2334_v53 }
0x14df   :  { %v3784_v62 = vpack.c.bf16 %v2340_v61, %v2335_v1 }
0x14e1   :  { %3786 = vmatprep.subr.msk.bf16.mxu1 %vm4077_vm5, %v3784_v62 }
0x14e2   :  { %3789 = vmatpush3.bf16.xpose.msk.msra.mxu1 %vm4077_vm5, %v3784_v62 }
0x1566   :  { %v2120_v8 = vpop.xlane.xlu1 %2119 }
0x1567   :  { %v2122_v10 = vmul.f32 0.03125, %v2120_v8  ;;  %v2117_v12 = vpop.xlane.xlu0 %2116 }
0x1568   :  { %v2121_v13 = vmul.f32 0.03125, %v2117_v12  ;;  %v2345_v12 = vld [vmem:[#allocation2 + $0x1c8] sm:$0xff] }
0x1569   :  { %v2124_v14 = vsub.f32 %v4310_v63, %v2122_v10  ;;  %v2344_v10 = vld [vmem:[#allocation2 + $0x1c0] sm:$0xff] }
0x156a   :  { %v2123_v3 = vsub.f32 %v4313_v0, %v2121_v13  ;;  %v2346_v13 = vld [vmem:[#allocation2 + $0x1d0] sm:$0xff] }
0x156b   :  { %v2126_v51 = vmul.f32 %v2124_v14, %v2124_v14  ;;  %v2158_v46 = vmul.f32 %v3108_v45, %v2124_v14  ;;  %v3776_v14 = vpack.c.bf16 %v2345_v12, %v2344_v10  ;;  %v3137_v10 = vld [vmem:[%s4465_s5 + $0x28] sm:$0xff]  ;;  %v3138_v12 = vld [vmem:[%s4465_s5 + $0x30] sm:$0xff] }
0x156c   :  { %v2125_v16 = vmul.f32 %v2123_v3, %v2123_v3  ;;  %v2157_v48 = vmul.f32 %v3108_v45, %v2123_v3  ;;  %v2347_v3 = vld [vmem:[#allocation2 + $0x1d8] sm:$0xff] }
0x156d   :  { %v2130_v4 = vsel %vm57_vm0, %v2126_v51, 0.0  ;;  %v3780_v51 = vpack.c.bf16 %v2347_v3, %v2346_v13  ;;  %3777 = vmatprep.subr.bf16.mxu0 %v3776_v14 }
0x156e   :  { %2131 = vadd.xlane.f32.xlu1 %v2130_v4  ;;  %v2127_v17 = vsel %vm57_vm0, %v2125_v16, 0.0 }
0x156f   :  { %2128 = vadd.xlane.f32.xlu0 %v2127_v17 }
0x15fb   :  { %v2132_v31 = vpop.xlane.xlu1 %2131 }
0x15fc   :  { %v2134_v32 = vmul.f32 0.032258064, %v2132_v31  ;;  %v2129_v33 = vpop.xlane.xlu0 %2128  ;;  %v3119_v31 = vld [vmem:[%s4467_s7 + $0x16] ss:$0 sm:$0xff] }
0x15fd   :  { %v2133_v34 = vmul.f32 0.032258064, %v2129_v33 }
0x15fe   :  { %3886 = vrsqrt.f32 %v2134_v32  ;;  %vm2144_vm7 = vcmp.eq.f32.partialorder %v2134_v32, inf  ;;  %v2147_v38 = vand.u32 2147483648, %v2134_v32  ;;  %vm2146_vm8 = vcmp.eq.f32.partialorder %v2134_v32, 0.0 }
0x15ff   :  { %3888 = vrsqrt.f32 %v2133_v34  ;;  %vm2137_vm9 = vcmp.eq.f32.partialorder %v2133_v34, inf  ;;  %v2140_v41 = vand.u32 2147483648, %v2133_v34  ;;  %vm2139_vm10 = vcmp.eq.f32.partialorder %v2133_v34, 0.0 }
0x1608   :  { %v3887_v35 = vpop.eup %3886 }
0x1609   :  { %v3889_v36 = vpop.eup %3888  ;;  %v2143_v37 = vmul.f32 %v3887_v35, %v2134_v32 }
0x160a   :  { %v2136_v39 = vmul.f32 %v3889_v36, %v2133_v34  ;;  %v2623_v36 = vld [vmem:[#allocation2 + $0x1e0] sm:$0xff] }
0x160b   :  { %v2145_v40 = vsel %vm2144_vm7, %v2134_v32, %v2143_v37  ;;  %v2624_v37 = vld [vmem:[#allocation2 + $0x1e8] sm:$0xff] }
0x160c   :  { %v2148_v42 = vsel %vm2146_vm8, %v2147_v38, %v2145_v40  ;;  %v2138_v15 = vsel %vm2137_vm9, %v2133_v34, %v2136_v39  ;;  %v3794_v38 = vpack.c.bf16 %v2624_v37, %v2623_v36  ;;  %v3134_v36 = vld [vmem:[%s4467_s7 + $0x1e] ss:$0 sm:$0xff] }
0x160d   :  { %v2150_v18 = vadd.f32 1e-06, %v2148_v42  ;;  %v2141_v43 = vsel %vm2139_vm10, %v2140_v41, %v2138_v15  ;;  %v2625_v42 = vld [vmem:[#allocation2 + $0x1f0] sm:$0xff]  ;;  %v2626_v15 = vld [vmem:[#allocation2 + $0x1f8] sm:$0xff] }
0x160e   :  { %v2149_v44 = vadd.f32 1e-06, %v2141_v43  ;;  %v3798_v45 = vpack.c.bf16 %v2626_v15, %v2625_v42 }
0x160f   :  { %3890 = vrcp.f32 %v2150_v18 }
0x1610   :  { %3892 = vrcp.f32 %v2149_v44 }
0x1619   :  { %v3891_v47 = vpop.eup %3890 }
0x161a   :  { %v3893_v49 = vpop.eup %3892  ;;  %v2160_v55 = vmul.f32 %v3891_v47, %v2158_v46 }
0x161b   :  { %v2159_v56 = vmul.f32 %v3893_v49, %v2157_v48  ;;  %v3129_v48 = vld [vmem:[%s4467_s7 + $0x17] ss:$0 sm:$0xff] }
0x161c   :  { %v2166_v58 = vadd.f32 %v3109_v50, %v2160_v55 }
0x161d   :  { %v2165_v57 = vadd.f32 %v3109_v50, %v2159_v56 }
0x161f   :  { %3530 = vmatprep.mubr.msk.f32.mxu0 %vm57_vm0, %v2165_v57 }
0x1620   :  { %3531 = vmatmul.mubr.msk.f32.vlgmr.msra.gmra.mrb[18].mxu0 %vm57_vm0, %v2166_v58 }
0x1621   :  { %3552 = vmatprep.mubr.msk.f32.mxu0 %vm57_vm0, %v4126_v9  ;;  %3779 = vmatpush3.bf16.msra.mxu0 %v3776_v14  ;;  %v3139_v14 = vld [vmem:[%s4465_s5 + $0x38] sm:$0xff] }
0x1622   :  { %3781 = vmatprep.subr.bf16.mxu0 %v3780_v51  ;;  %v3806_v3 = vpack.c.bf16 %v3139_v14, %v3138_v12 }
0x1625   :  { %3783 = vmatpush3.bf16.msra.mxu0 %v3780_v51  ;;  %v3144_v51 = vld [vmem:[%s4466_s6 + $0x40] sm:$0xff] }
0x1628   :  { %3553 = vmatmul.mubr.msk.f32.vlgmr.msra.gmra.mrb[20].mxu0 %vm57_vm0, %v4133_v19 }
0x16f3   :  { %v3532_v9 = vpop.f32.mrb[18].mxu0 }
0x16f4   :  { %v2249_v6 = vpop.f32.mrb[19].mxu0  ;;  %v2255_v8 = vadd.f32 %v3532_v9, %v3111_v54 }
0x16f5   :  { %v2250_v7 = vadd.f32 %v3111_v54, %v2249_v6 }
0x16f7   :  { %3559 = vmatprep.mubr.msk.f32.mxu1 %vm57_vm0, %v2250_v7 }
0x16f8   :  { %3560 = vmatmul.mubr.msk.f32.vlgmr.msra.gmra.mrb[24].mxu1 %vm57_vm0, %v2255_v8  ;;  %v3136_v8 = vld [vmem:[%s4465_s5 + $0x20] sm:$0xff] }
0x16f9   :  { %v3802_v13 = vpack.c.bf16 %v3137_v10, %v3136_v8 }
0x16fb   :  { %v3554_v30 = vpop.f32.mrb[20].mxu0  ;;  %3803 = vmatprep.subr.bf16.mxu1 %v3802_v13 }
0x16fc   :  { %v2419_v32 = vpop.f32.mrb[21].mxu0  ;;  %v2425_v33 = vadd.f32 %v3554_v30, %v3119_v31  ;;  %3805 = vmatpush3.bf16.msra.mxu1 %v3802_v13 }
0x16fd   :  { %v2420_v34 = vadd.f32 %v3119_v31, %v2419_v32  ;;  %3807 = vmatprep.subr.bf16.mxu1 %v3806_v3 }
0x16ff   :  { %v3790_v35 = vpack.c.bf16 %v2425_v33, %v2420_v34 }
0x1700   :  { %3809 = vmatpush3.bf16.msra.mxu1 %v3806_v3 }
0x1701   :  { %3791 = vmatprep.subr.bf16.mxu0 %v3790_v35 }
0x1702   :  { %3793 = vmatpush3.bf16.msra.mxu0 %v3790_v35 }
0x1703   :  { %3795 = vmatprep.subr.bf16.mxu0 %v3794_v38 }
0x17cb   :  { %v3561_v11 = vpop.f32.mrb[24].mxu1 }
0x17cc   :  { %v2516_v16 = vmul.f32 0.17677669, %v3561_v11  ;;  %v2506_v4 = vpop.f32.mrb[25].mxu1  ;;  %v3145_v11 = vld [vmem:[%s4466_s6 + $0x48] sm:$0xff] }
0x17cd   :  { %v2515_v17 = vmul.f32 0.17677669, %v2506_v4  ;;  %v3810_v4 = vpack.c.bf16 %v3145_v11, %v3144_v51 }
0x17ce   :  { %v2518_v52 = vadd.f32 %v2516_v16, %v4164_v2  ;;  %v3146_v16 = vld [vmem:[%s4466_s6 + $0x50] sm:$0xff] }
0x17cf   :  { %v2517_v20 = vadd.f32 %v2515_v17, %v4169_v5  ;;  %v3147_v17 = vld [vmem:[%s4466_s6 + $0x58] sm:$0xff] }
0x17d0   :  { %v2522_v21 = vsel %vm462_vm6, %v2518_v52, -inf }
0x17d1   :  { %2523 = vmax.xlane.f32.xlu1 %v2522_v21  ;;  %v2519_v22 = vsel %vm462_vm6, %v2517_v20, -inf  ;;  %v3149_v21 = vld [vmem:[%s4466_s6 + $0x68] sm:$0xff] }
0x17d2   :  { %2520 = vmax.xlane.f32.xlu0 %v2519_v22 }
0x185e   :  { %v2524_v23 = vpop.xlane.xlu1 %2523 }
0x185f   :  { %v2526_v24 = vsub.f32 %v2518_v52, %v2524_v23  ;;  %v2521_v25 = vpop.xlane.xlu0 %2520  ;;  %v3814_v52 = vpack.c.bf16 %v3147_v17, %v3146_v16 }
0x1860   :  { %v2525_v26 = vsub.f32 %v2517_v20, %v2521_v25  ;;  %v3148_v20 = vld [vmem:[%s4466_s6 + $0x60] sm:$0xff] }
0x1861   :  { %v2529_v27 = vmul.f32 1.442695, %v2526_v24  ;;  %v3818_v22 = vpack.c.bf16 %v3149_v21, %v3148_v20 }
0x1862   :  { %v2527_v19 = vmul.f32 1.442695, %v2525_v26 }
0x1863   :  { %3894 = vpow2.f32 %v2529_v27 }
0x1864   :  { %3896 = vpow2.f32 %v2527_v19 }
0x186d   :  { %v3895_v28 = vpop.eup %3894 }
0x186e   :  { %v3897_v29 = vpop.eup %3896  ;;  %v2534_v2 = vsel %vm462_vm6, %v3895_v28, 0.0 }
0x186f   :  { %2535 = vadd.xlane.f32.xlu1 %v2534_v2  ;;  %v2531_v5 = vsel %vm462_vm6, %v3897_v29, 0.0 }
0x1870   :  { %2532 = vadd.xlane.f32.xlu0 %v2531_v5 }
0x18fc   :  { %v2536_v39 = vpop.xlane.xlu1 %2535 }
0x18fd   :  { %3898 = vrcp.f32 %v2536_v39  ;;  %v2533_v40 = vpop.xlane.xlu0 %2532 }
0x18fe   :  { %3900 = vrcp.f32 %v2533_v40 }
0x1907   :  { %v3899_v41 = vpop.eup %3898 }
0x1908   :  { %v3901_v18 = vpop.eup %3900  ;;  %v2540_v44 = vmul.f32 %v3899_v41, %v3895_v28  ;;  %v3135_v41 = vld [vmem:[%s4467_s7 + $0x1f] ss:$0 sm:$0xff] }
0x1909   :  { %v2539_v43 = vmul.f32 %v3901_v18, %v3897_v29 }
0x190b   :  { %3566 = vmatprep.mubr.msk.f32.mxu0 %vm462_vm6, %v2539_v43 }
0x190c   :  { %3567 = vmatmul.mubr.msk.f32.vlgmr.msra.gmra.mrb[22].mxu0 %vm462_vm6, %v2540_v44  ;;  %v3150_v44 = vld [vmem:[%s4466_s6 + $0x70] sm:$0xff] }
0x190d   :  { %3797 = vmatpush3.bf16.msra.mxu0 %v3794_v38 }
0x190e   :  { %3799 = vmatprep.subr.bf16.mxu0 %v3798_v45 }
0x1911   :  { %3801 = vmatpush3.bf16.msra.mxu0 %v3798_v45  ;;  %v3151_v45 = vld [vmem:[%s4466_s6 + $0x78] sm:$0xff] }
0x1912   :  { %3811 = vmatprep.subr.bf16.mxu0 %v3810_v4 }
0x19df   :  { %v3568_v46 = vpop.f32.mrb[22].mxu0 }
0x19e0   :  { %v2613_v47 = vpop.f32.mrb[23].mxu0 }
0x19e1   :  { %3577 = vmatprep.mubr.msk.f32.mxu0 %vm57_vm0, %v2613_v47  ;;  %v3141_v47 = vld [vmem:[%s4467_s7 + $0x19] ss:$0 sm:$0xff] }
0x19e2   :  { %3578 = vmatmul.mubr.msk.f32.vlgmr.msra.gmra.mrb[24].mxu0 %vm57_vm0, %v3568_v46  ;;  %v3822_v46 = vpack.c.bf16 %v3151_v45, %v3150_v44 }
0x19e3   :  { %3813 = vmatpush3.bf16.msra.mxu0 %v3810_v4 }
0x19e4   :  { %3815 = vmatprep.subr.bf16.mxu0 %v3814_v52 }
0x19e7   :  { %3817 = vmatpush3.bf16.msra.mxu0 %v3814_v52 }
0x19e8   :  { %3819 = vmatprep.subr.bf16.mxu0 %v3818_v22 }
0x19eb   :  { %3821 = vmatpush3.bf16.msra.mxu0 %v3818_v22 }
0x19ec   :  { %3823 = vmatprep.subr.bf16.mxu0 %v3822_v46 }
0x19ef   :  { %3825 = vmatpush3.bf16.msra.mxu0 %v3822_v46 }
0x1ab5   :  { %v3579_v49 = vpop.f32.mrb[24].mxu0 }
0x1ab6   :  { %v2710_v50 = vadd.f32 %v3579_v49, %v3129_v48  ;;  %v2704_v55 = vpop.f32.mrb[25].mxu0 }
0x1ab7   :  { %v2705_v56 = vadd.f32 %v3129_v48, %v2704_v55 }
0x1ab8   :  { %v4366_v57 = vadd.f32 %v2710_v50, %v4310_v63 }
0x1ab9   :  { %v4369_v58 = vadd.f32 %v2705_v56, %v4313_v0 }
0x1aba   :  { %v2720_v59 = vsel %vm57_vm0, %v4366_v57, 0.0 }
0x1abb   :  { %2721 = vadd.xlane.f32.xlu1 %v2720_v59  ;;  %v2717_v60 = vsel %vm57_vm0, %v4369_v58, 0.0 }
0x1abc   :  { %2718 = vadd.xlane.f32.xlu0 %v2717_v60  ;;  %v3153_v60 = vld [vmem:[%s4467_s7 + $0x18] ss:$0 sm:$0xff] }
0x1b48   :  { %v2722_v61 = vpop.xlane.xlu1 %2721 }
0x1b49   :  { %v2724_v53 = vmul.f32 0.03125, %v2722_v61  ;;  %v2719_v1 = vpop.xlane.xlu0 %2718 }
0x1b4a   :  { %v2723_v62 = vmul.f32 0.03125, %v2719_v1 }
0x1b4b   :  { %v2726_v54 = vsub.f32 %v4366_v57, %v2724_v53 }
0x1b4c   :  { %v2725_v63 = vsub.f32 %v4369_v58, %v2723_v62 }
0x1b4d   :  { %v2728_v9 = vmul.f32 %v2726_v54, %v2726_v54  ;;  %v2760_v37 = vmul.f32 %v3134_v36, %v2726_v54 }
0x1b4e   :  { %v2727_v6 = vmul.f32 %v2725_v63, %v2725_v63  ;;  %v2759_v39 = vmul.f32 %v3134_v36, %v2725_v63 }
0x1b4f   :  { %v2732_v0 = vsel %vm57_vm0, %v2728_v9, 0.0 }
0x1b50   :  { %2733 = vadd.xlane.f32.xlu1 %v2732_v0  ;;  %v2729_v7 = vsel %vm57_vm0, %v2727_v6, 0.0 }
0x1b51   :  { %2730 = vadd.xlane.f32.xlu0 %v2729_v7 }
0x1bdd   :  { %v2734_v23 = vpop.xlane.xlu1 %2733 }
0x1bde   :  { %v2736_v24 = vmul.f32 0.032258064, %v2734_v23  ;;  %v2731_v25 = vpop.xlane.xlu0 %2730 }
0x1bdf   :  { %v2735_v26 = vmul.f32 0.032258064, %v2731_v25 }
0x1be0   :  { %3902 = vrsqrt.f32 %v2736_v24  ;;  %vm2746_vm5 = vcmp.eq.f32.partialorder %v2736_v24, inf  ;;  %v2749_v29 = vand.u32 2147483648, %v2736_v24  ;;  %vm2748_vm6 = vcmp.eq.f32.partialorder %v2736_v24, 0.0 }
0x1be1   :  { %3904 = vrsqrt.f32 %v2735_v26  ;;  %vm2739_vm11 = vcmp.eq.f32.partialorder %v2735_v26, inf  ;;  %v2742_v30 = vand.u32 2147483648, %v2735_v26  ;;  %vm2741_vm12 = vcmp.eq.f32.partialorder %v2735_v26, 0.0 }
0x1bea   :  { %v3903_v27 = vpop.eup %3902 }
0x1beb   :  { %v3905_v19 = vpop.eup %3904  ;;  %v2745_v28 = vmul.f32 %v3903_v27, %v2736_v24 }
0x1bec   :  { %v2738_v2 = vmul.f32 %v3905_v19, %v2735_v26 }
0x1bed   :  { %v2747_v5 = vsel %vm2746_vm5, %v2736_v24, %v2745_v28 }
0x1bee   :  { %v2750_v31 = vsel %vm2748_vm6, %v2749_v29, %v2747_v5  ;;  %v2740_v32 = vsel %vm2739_vm11, %v2735_v26, %v2738_v2  ;;  %v3156_v29 = vld [vmem:[%s4468_s8] ss:$0 sm:$0xff] }
0x1bef   :  { %v2752_v33 = vadd.f32 1e-06, %v2750_v31  ;;  %v2743_v34 = vsel %vm2741_vm12, %v2742_v30, %v2740_v32  ;;  %v3157_v31 = vld [vmem:[%s4468_s8 + $0x1] ss:$0 sm:$0xff] }
0x1bf0   :  { %v2751_v35 = vadd.f32 1e-06, %v2743_v34 }
0x1bf1   :  { %3906 = vrcp.f32 %v2752_v33 }
0x1bf2   :  { %3908 = vrcp.f32 %v2751_v35 }
0x1bfb   :  { %v3907_v38 = vpop.eup %3906 }
0x1bfc   :  { %v3909_v40 = vpop.eup %3908  ;;  %v2762_v42 = vmul.f32 %v3907_v38, %v2760_v37 }
0x1bfd   :  { %v2761_v15 = vmul.f32 %v3909_v40, %v2759_v39 }
0x1bfe   :  { %v2768_v43 = vadd.f32 %v3135_v41, %v2762_v42 }
0x1bff   :  { %v2767_v18 = vadd.f32 %v3135_v41, %v2761_v15 }
0x1c01   :  { %3588 = vmatprep.mubr.msk.f32.mxu1 %vm57_vm0, %v2767_v18 }
0x1c02   :  { %3589 = vmatmul.mubr.msk.f32.vlgmr.msra.gmra.mrb[26].mxu1 %vm57_vm0, %v2768_v43 }
0x1cd5   :  { %v3590_v48 = vpop.f32.mrb[26].mxu1 }
0x1cd6   :  { %v2857_v49 = vadd.f32 %v3590_v48, %v3141_v47  ;;  %v2851_v50 = vpop.f32.mrb[27].mxu1 }
0x1cd7   :  { %v2852_v55 = vadd.f32 %v3141_v47, %v2851_v50 }
0x1cd8   :  { %v2861_v59 = vmax.f32 %v2857_v49, 0.0 }
0x1cd9   :  { %v2860_v56 = vmax.f32 %v2852_v55, 0.0 }
0x1cdb   :  { %3607 = vmatprep.mubr.msk.f32.mxu0 %vm1426_vm15, %v2860_v56 }
0x1cdc   :  { %3608 = vmatmul.mubr.msk.f32.vlgmr.msra.gmra.mrb[26].mxu0 %vm1426_vm15, %v2861_v59 }
0x1daf   :  { %v3609_v61 = vpop.f32.mrb[26].mxu0 }
0x1db0   :  { %v2954_v53 = vadd.f32 %v3609_v61, %v3153_v60  ;;  %v2948_v1 = vpop.f32.mrb[27].mxu0 }
0x1db1   :  { %v2949_v62 = vadd.f32 %v3153_v60, %v2948_v1 }
0x1db2   :  { %v2958_v54 = vadd.f32 %v2954_v53, %v4366_v57 }
0x1db3   :  { %v2957_v63 = vadd.f32 %v2949_v62, %v4369_v58 }
0x1db4   :  { %v2964_v9 = vsel %vm57_vm0, %v2958_v54, 0.0 }
0x1db5   :  { %2965 = vadd.xlane.f32.xlu1 %v2964_v9  ;;  %v2961_v6 = vsel %vm57_vm0, %v2957_v63, 0.0 }
0x1db6   :  { %2962 = vadd.xlane.f32.xlu0 %v2961_v6 }
0x1e42   :  { %v2966_v0 = vpop.xlane.xlu1 %2965 }
0x1e43   :  { %v2968_v7 = vmul.f32 0.03125, %v2966_v0  ;;  %v2963_v8 = vpop.xlane.xlu0 %2962 }
0x1e44   :  { %v2967_v10 = vmul.f32 0.03125, %v2963_v8 }
0x1e45   :  { %v2970_v12 = vsub.f32 %v2958_v54, %v2968_v7 }
0x1e46   :  { %v2969_v13 = vsub.f32 %v2957_v63, %v2967_v10 }
0x1e47   :  { %v2972_v14 = vmul.f32 %v2970_v12, %v2970_v12  ;;  %v3004_v2 = vmul.f32 %v3156_v29, %v2970_v12 }
0x1e48   :  { %v2971_v3 = vmul.f32 %v2969_v13, %v2969_v13  ;;  %v3003_v30 = vmul.f32 %v3156_v29, %v2969_v13 }
0x1e49   :  { %v2976_v51 = vsel %vm57_vm0, %v2972_v14, 0.0 }
0x1e4a   :  { %2977 = vadd.xlane.f32.xlu1 %v2976_v51  ;;  %v2973_v57 = vsel %vm57_vm0, %v2971_v3, 0.0 }
0x1e4b   :  { %2974 = vadd.xlane.f32.xlu0 %v2973_v57 }
0x1ed7   :  { %v2978_v58 = vpop.xlane.xlu1 %2977 }
0x1ed8   :  { %v2980_v11 = vmul.f32 0.032258064, %v2978_v58  ;;  %v2975_v16 = vpop.xlane.xlu0 %2974 }
0x1ed9   :  { %v2979_v4 = vmul.f32 0.032258064, %v2975_v16 }
0x1eda   :  { %3910 = vrsqrt.f32 %v2980_v11  ;;  %vm2990_vm13 = vcmp.eq.f32.partialorder %v2980_v11, inf  ;;  %v2993_v21 = vand.u32 2147483648, %v2980_v11  ;;  %vm2992_vm14 = vcmp.eq.f32.partialorder %v2980_v11, 0.0 }
0x1edb   :  { %3912 = vrsqrt.f32 %v2979_v4  ;;  %vm2983_vm15 = vcmp.eq.f32.partialorder %v2979_v4, inf  ;;  %v2986_v24 = vand.u32 2147483648, %v2979_v4  ;;  %vm2985_vm1 = vcmp.eq.f32.partialorder %v2979_v4, 0.0 }
0x1ee4   :  { %v3911_v17 = vpop.eup %3910 }
0x1ee5   :  { %v3913_v52 = vpop.eup %3912  ;;  %v2989_v20 = vmul.f32 %v3911_v17, %v2980_v11 }
0x1ee6   :  { %v2982_v22 = vmul.f32 %v3913_v52, %v2979_v4 }
0x1ee7   :  { %v2991_v23 = vsel %vm2990_vm13, %v2980_v11, %v2989_v20 }
0x1ee8   :  { %v2994_v25 = vsel %vm2992_vm14, %v2993_v21, %v2991_v23  ;;  %v2984_v26 = vsel %vm2983_vm15, %v2979_v4, %v2982_v22 }
0x1ee9   :  { %v2996_v27 = vadd.f32 1e-06, %v2994_v25  ;;  %v2987_v19 = vsel %vm2985_vm1, %v2986_v24, %v2984_v26 }
0x1eea   :  { %v2995_v28 = vadd.f32 1e-06, %v2987_v19 }
0x1eeb   :  { %3914 = vrcp.f32 %v2996_v27 }
0x1eec   :  { %3916 = vrcp.f32 %v2995_v28 }
0x1ef5   :  { %v3915_v5 = vpop.eup %3914 }
0x1ef6   :  { %v3917_v32 = vpop.eup %3916  ;;  %v3006_v33 = vmul.f32 %v3915_v5, %v3004_v2 }
0x1ef7   :  { %v3005_v34 = vmul.f32 %v3917_v32, %v3003_v30 }
0x1ef8   :  { %v3012_v35 = vadd.f32 %v3157_v31, %v3006_v33 }
0x1ef9   :  { %v3011_v36 = vadd.f32 %v3157_v31, %v3005_v34 }
0x1efa   :  { %3014 = vst.msk [vmem:[#allocation5 + $0x8] sm:$0xff] %vm57_vm0, %v3012_v35 }
0x1efb   :  { %3013 = vst.msk [vmem:[#allocation5] sm:$0xff] %vm57_vm0, %v3011_v36 }
0x1efc   :  { %3951 = shalt.err (!%p3948_p12)
}
0x1efd   :  { %s3952_s13 = scalar_lea.hbm %s4469_s9, 256 }
0x1efe   :  { %p3953_p13 = scmp.ne.s32.totalorder %s4469_s9, %s3952_s13  ;;  %p3956_p0 = scmp.lt.u32.totalorder %s3952_s13, %s4469_s9 }
0x1f00   :  { %p3958_p1 = pnand %p3956_p0, %p3953_p13 }
0x1f02   :  { %3961 = shalt.err (!%p3958_p1)
}
0x1f03   :  { %3026 = dma.vmem_to_hbm [thread:$0]  %s3021_s11, 256, %s4469_s9, [#allocation4], %s3967_s19, %s3967_s19, %s3968_s20  }
0x1f04   :  { %3964 = dma.done.wait [#allocation4], 256  }
0x1f05   :  { %3965 = vsyncadd [#allocation4], 4294967040 }
0x1f06   :  { %3030 = vsyncpa [#allocation3], 1 }
0x1f07   :  { %3031 = vsyncpa [#allocation4], 1 }

</bundles_post_ra>
